<compile_context>
chip_gen: v7x
topology: tpu7x:2x2x1
jax: 0.10.0
libtpu: 0.0.40
codegen_flags: <defaults>
</compile_context>

<pallas_src>
import functools

import jax
import jax.numpy as jnp
from jax.experimental import pallas as pl
from jax.experimental.pallas import tpu as pltpu

LANE = 128
_VMEM_LIMIT = 32 * 1024 * 1024


def _round_up(x, m):
    return ((x + m - 1) // m) * m


# ----------------------------------------------------------------------------
# Pallas kernels
# ----------------------------------------------------------------------------
def _linear_kernel(x_ref, w_ref, b_ref, o_ref, *, act):
    # bf16 operands on the MXU, f32 accumulation; 128-lane-dense output.
    y = jnp.dot(x_ref[...].astype(jnp.bfloat16), w_ref[...],
                preferred_element_type=jnp.float32)
    y = y + b_ref[...]
    if act == "relu":
        y = jnp.maximum(y, 0.0)
    o_ref[...] = y.astype(o_ref.dtype)


def pallas_linear(x, w, b, act=None, out_dtype=jnp.float32, row_tile=512):
    """x: (N, Din), w: (Din, Dout) bf16, b: (1, Dout) f32 -> (N, Dout)."""
    n, din = x.shape
    dout = w.shape[1]
    # Fixed row tile (multiple of 16 for bf16 sublane packing); fall back to
    # the whole array when it is small or the tile does not divide n.
    rb = row_tile if (n % row_tile == 0 and n > row_tile) else n
    grid = (n // rb,)
    return pl.pallas_call(
        functools.partial(_linear_kernel, act=act),
        out_shape=jax.ShapeDtypeStruct((n, dout), out_dtype),
        grid=grid,
        in_specs=[
            pl.BlockSpec((rb, din), lambda i: (i, 0)),
            pl.BlockSpec((din, dout), lambda i: (0, 0)),
            pl.BlockSpec((1, dout), lambda i: (0, 0)),
        ],
        out_specs=pl.BlockSpec((rb, dout), lambda i: (i, 0)),
        compiler_params=pltpu.CompilerParams(
            dimension_semantics=("parallel",),
            vmem_limit_bytes=_VMEM_LIMIT),
    )(x, w, b)


def _dfine_transformer_kernel(
        tok_ref, qemb_ref,
        enc_in_w_ref, enc_in_b_ref, enc_wqkv_ref, enc_wo_ref,
        enc_ln1_g_ref, enc_ln1_b_ref,
        enc_ffn1_w_ref, enc_ffn1_b_ref, enc_ffn2_w_ref, enc_ffn2_b_ref,
        enc_ln2_g_ref, enc_ln2_b_ref,
        dec_wq_ref, dec_wkv_ref, dec_wo_ref,
        dec_ln1_g_ref, dec_ln1_b_ref,
        dec_ffn1_w_ref, dec_ffn1_b_ref, dec_ffn2_w_ref, dec_ffn2_b_ref,
        dec_ln2_g_ref, dec_ln2_b_ref,
        head_w_ref, head_b_ref,
        out_ref, *, d_model):
    """Fused encoder + decoder + heads for one batch tile.

    All feature dims are zero-padded to 128-lane multiples; gamma/beta/bias
    pads are zero so padded lanes stay exactly zero through every layer.
    """
    bf16 = jnp.bfloat16
    bt, s, _ = tok_ref.shape
    nq, D = qemb_ref.shape               # D = padded d_model (lane multiple)
    inv_d = 1.0 / float(d_model)

    def mm(x, w):
        # bf16 MXU matmul, f32 accumulation.
        return jnp.dot(x.astype(bf16), w.astype(bf16),
                       preferred_element_type=jnp.float32)

    def ln(x, g_ref, b_ref):
        # LayerNorm over the real d_model lanes: padded lanes are zero, so
        # full-vreg sums equal real-lane sums; use E[x^2]-mu^2 for variance.
        mu = jnp.sum(x, axis=-1, keepdims=True) * inv_d
        ex2 = jnp.sum(x * x, axis=-1, keepdims=True) * inv_d
        var = ex2 - mu * mu
        y = (x - mu) * jax.lax.rsqrt(var + 1e-5)
        return y * g_ref[...] + b_ref[...]      # zero-padded gamma/beta

    def softmax(sc):
        sc = sc - jnp.max(sc, axis=-1, keepdims=True)
        p = jnp.exp(sc)
        return p * pl.reciprocal(jnp.sum(p, axis=-1, keepdims=True),
                                 approx=True)

    tok = tok_ref[...].reshape(bt * s, tok_ref.shape[-1])       # (BT*S, C2p)

    # ---- encoder: input projection + self-attention + LN + FFN + LN
    t = mm(tok, enc_in_w_ref[...]) + enc_in_b_ref[...]          # (BT*S, D)
    qkv = mm(t, enc_wqkv_ref[...])                              # (BT*S, 3D)
    q = qkv[:, 0:D].reshape(bt, s, D)          # scale pre-folded into weights
    k = qkv[:, D:2 * D].reshape(bt, s, D)
    v = qkv[:, 2 * D:3 * D].reshape(bt, s, D)
    sc = jnp.einsum('bqd,bkd->bqk', q.astype(bf16), k.astype(bf16),
                    preferred_element_type=jnp.float32)
    p = softmax(sc)
    att = jnp.einsum('bqk,bkd->bqd', p.astype(bf16), v.astype(bf16),
                     preferred_element_type=jnp.float32)
    sa = mm(att.reshape(bt * s, D), enc_wo_ref[...])
    t2 = ln(t + sa, enc_ln1_g_ref, enc_ln1_b_ref)

    ff = jnp.maximum(mm(t2, enc_ffn1_w_ref[...]) + enc_ffn1_b_ref[...], 0.0)
    ff = mm(ff, enc_ffn2_w_ref[...]) + enc_ffn2_b_ref[...]
    mem = ln(t2 + ff, enc_ln2_g_ref, enc_ln2_b_ref)             # (BT*S, D)

    # ---- decoder: object queries cross-attend over encoder memory
    q0 = qemb_ref[...]                                          # (Nq, D)
    qd = mm(q0, dec_wq_ref[...])               # scale pre-folded into weights
    kv = mm(mem, dec_wkv_ref[...])                              # (BT*S, 2D)
    kd = kv[:, 0:D].reshape(bt, s, D)
    vd = kv[:, D:2 * D].reshape(bt, s, D)
    qdb = jnp.broadcast_to(qd[None], (bt, nq, D))
    sc = jnp.einsum('bqd,bkd->bqk', qdb.astype(bf16), kd.astype(bf16),
                    preferred_element_type=jnp.float32)
    p = softmax(sc)
    ca = jnp.einsum('bqk,bkd->bqd', p.astype(bf16), vd.astype(bf16),
                    preferred_element_type=jnp.float32)          # (BT, Nq, D)
    ca = mm(ca.reshape(bt * nq, D), dec_wo_ref[...])
    q0b = jnp.broadcast_to(q0[None], (bt, nq, D)).reshape(bt * nq, D)
    q2 = ln(q0b + ca, dec_ln1_g_ref, dec_ln1_b_ref)

    ff = jnp.maximum(mm(q2, dec_ffn1_w_ref[...]) + dec_ffn1_b_ref[...], 0.0)
    ff = mm(ff, dec_ffn2_w_ref[...]) + dec_ffn2_b_ref[...]
    qf = ln(q2 + ff, dec_ln2_g_ref, dec_ln2_b_ref)               # (BT*Nq, D)

    # ---- fused cls+box head into a lane-dense 128-wide slab
    head = mm(qf, head_w_ref[...]) + head_b_ref[...]             # (BT*Nq, HP)
    out_ref[...] = head.reshape(out_ref.shape).astype(out_ref.dtype)


def pallas_dfine_transformer(tokens, q_embed, prep, d_model):
    """tokens: (B, S, C2p), q_embed: (Nq, Dp) -> (B, Nq, HEAD_PAD) head slab."""
    batch, seq, c2p = tokens.shape
    num_q, d_pad = q_embed.shape
    head_pad = prep["head_w"].shape[1]

    # Batched kernel; 2 batch tiles when batch is even so both v7x TCs get
    # work, otherwise one tile (single serial step on 1-TC v5e/v6e).
    num_tiles = 2 if (batch % 2 == 0 and batch >= 2) else 1
    bt = batch // num_tiles

    def full2d(a):
        return pl.BlockSpec(a.shape, lambda b: (0, 0))

    weights = [
        prep["enc_in_w"], prep["enc_in_b"], prep["enc_wqkv"], prep["enc_wo"],
        prep["enc_ln1_g"], prep["enc_ln1_b"],
        prep["enc_ffn1_w"], prep["enc_ffn1_b"],
        prep["enc_ffn2_w"], prep["enc_ffn2_b"],
        prep["enc_ln2_g"], prep["enc_ln2_b"],
        prep["dec_wq"], prep["dec_wkv"], prep["dec_wo"],
        prep["dec_ln1_g"], prep["dec_ln1_b"],
        prep["dec_ffn1_w"], prep["dec_ffn1_b"],
        prep["dec_ffn2_w"], prep["dec_ffn2_b"],
        prep["dec_ln2_g"], prep["dec_ln2_b"],
        prep["head_w"], prep["head_b"],
    ]
    in_specs = ([pl.BlockSpec((bt, seq, c2p), lambda b: (b, 0, 0)),
                 pl.BlockSpec((num_q, d_pad), lambda b: (0, 0))]
                + [full2d(w) for w in weights])

    return pl.pallas_call(
        functools.partial(_dfine_transformer_kernel, d_model=d_model),
        out_shape=jax.ShapeDtypeStruct((batch, num_q, head_pad), jnp.float32),
        grid=(num_tiles,),
        in_specs=in_specs,
        out_specs=pl.BlockSpec((bt, num_q, head_pad), lambda b: (b, 0, 0)),
        compiler_params=pltpu.CompilerParams(
            dimension_semantics=("parallel",),
            vmem_limit_bytes=_VMEM_LIMIT),
    )(tokens, q_embed, *weights)


# ----------------------------------------------------------------------------
# JAX glue: im2col patch extraction (conv matmul runs in Pallas)
# ----------------------------------------------------------------------------
def im2col(x, k=3, stride=2, pad=1):
    """x: (B, H, W, C) NHWC -> (B, Ho, Wo, k*k*C)."""
    xp = jnp.pad(x, ((0, 0), (pad, pad), (pad, pad), (0, 0)))
    _, hp, wp, _ = xp.shape
    ho = (hp - k) // stride + 1
    wo = (wp - k) // stride + 1
    cols = []
    for di in range(k):
        for dj in range(k):
            cols.append(
                xp[:, di:di + stride * (ho - 1) + 1:stride,
                      dj:dj + stride * (wo - 1) + 1:stride, :]
            )
    return jnp.concatenate(cols, axis=-1)


# ----------------------------------------------------------------------------
# Deterministic parameter initialization (synthetic weights, no checkpoint)
# ----------------------------------------------------------------------------
def init_params(key, c_in=4, c1=16, c2=32, d_model=32, d_ffn=64,
                num_queries=8, num_classes=4):
    ks = iter(jax.random.split(key, 32))

    def w(shape, scale=0.05):
        return scale * jax.random.normal(next(ks), shape, dtype=jnp.float32)

    zeros = lambda n: jnp.zeros((n,), jnp.float32)
    ones = lambda n: jnp.ones((n,), jnp.float32)

    return {
        "conv1_w": w((3 * 3 * c_in, c1)), "conv1_b": zeros(c1),
        "conv2_w": w((3 * 3 * c1, c2)), "conv2_b": zeros(c2),
        "enc_in_w": w((c2, d_model)), "enc_in_b": zeros(d_model),
        "enc_wq": w((d_model, d_model)), "enc_wk": w((d_model, d_model)),
        "enc_wv": w((d_model, d_model)), "enc_wo": w((d_model, d_model)),
        "enc_ln1_g": ones(d_model), "enc_ln1_b": zeros(d_model),
        "enc_ffn1_w": w((d_model, d_ffn)), "enc_ffn1_b": zeros(d_ffn),
        "enc_ffn2_w": w((d_ffn, d_model)), "enc_ffn2_b": zeros(d_model),
        "enc_ln2_g": ones(d_model), "enc_ln2_b": zeros(d_model),
        "query_embed": w((num_queries, d_model), scale=0.1),
        "dec_wq": w((d_model, d_model)), "dec_wk": w((d_model, d_model)),
        "dec_wv": w((d_model, d_model)), "dec_wo": w((d_model, d_model)),
        "dec_ln1_g": ones(d_model), "dec_ln1_b": zeros(d_model),
        "dec_ffn1_w": w((d_model, d_ffn)), "dec_ffn1_b": zeros(d_ffn),
        "dec_ffn2_w": w((d_ffn, d_model)), "dec_ffn2_b": zeros(d_model),
        "dec_ln2_g": ones(d_model), "dec_ln2_b": zeros(d_model),
        "cls_w": w((d_model, num_classes)), "cls_b": zeros(num_classes),
        "box_w": w((d_model, 4)), "box_b": zeros(4),
    }


def prepare_params(p):
    """One-time weight prep: fuse QKV/KV/heads, fold the attention scale into
    the Q projections, zero-pad every feature dim to a 128-lane multiple, and
    cast matmul operands to bf16. Run ONCE at setup, not per forward."""
    bf16 = jnp.bfloat16
    d = p["enc_in_w"].shape[1]
    d_ffn = p["enc_ffn1_w"].shape[1]
    c1 = p["conv1_w"].shape[1]
    c2 = p["conv2_w"].shape[1]
    num_classes = p["cls_w"].shape[1]

    D = _round_up(d, LANE)
    F = _round_up(d_ffn, LANE)
    HP = _round_up(num_classes + 4, LANE)
    C1P = _round_up(c1, LANE)
    C2P = _round_up(c2, LANE)
    scale = 1.0 / (d ** 0.5)

    def pad2(a, rows, cols):
        return jnp.pad(a, ((0, rows - a.shape[0]), (0, cols - a.shape[1])))

    def rowvec(v, cols):
        return jnp.pad(v, (0, cols - v.shape[0])).reshape(1, cols).astype(
            jnp.float32)

    # Per-projection 128-lane slots: q|k|v at column offsets 0, D, 2D.
    enc_wqkv = jnp.concatenate(
        [pad2(p["enc_wq"] * scale, D, D), pad2(p["enc_wk"], D, D),
         pad2(p["enc_wv"], D, D)], axis=1)
    dec_wkv = jnp.concatenate(
        [pad2(p["dec_wk"], D, D), pad2(p["dec_wv"], D, D)], axis=1)
    head_w = pad2(jnp.concatenate([p["cls_w"], p["box_w"]], axis=1), D, HP)
    head_b = rowvec(jnp.concatenate([p["cls_b"], p["box_b"]]), HP)

    prep = {
        "conv1_w": pad2(p["conv1_w"], p["conv1_w"].shape[0], C1P).astype(bf16),
        "conv1_b": rowvec(p["conv1_b"], C1P),
        "conv2_w": pad2(p["conv2_w"], p["conv2_w"].shape[0], C2P).astype(bf16),
        "conv2_b": rowvec(p["conv2_b"], C2P),
        "query_embed": pad2(p["query_embed"], p["query_embed"].shape[0],
                            D).astype(jnp.float32),
        "enc_in_w": pad2(p["enc_in_w"], C2P, D).astype(bf16),
        "enc_in_b": rowvec(p["enc_in_b"], D),
        "enc_wqkv": enc_wqkv.astype(bf16),
        "enc_wo": pad2(p["enc_wo"], D, D).astype(bf16),
        "enc_ln1_g": rowvec(p["enc_ln1_g"], D),
        "enc_ln1_b": rowvec(p["enc_ln1_b"], D),
        "enc_ffn1_w": pad2(p["enc_ffn1_w"], D, F).astype(bf16),
        "enc_ffn1_b": rowvec(p["enc_ffn1_b"], F),
        "enc_ffn2_w": pad2(p["enc_ffn2_w"], F, D).astype(bf16),
        "enc_ffn2_b": rowvec(p["enc_ffn2_b"], D),
        "enc_ln2_g": rowvec(p["enc_ln2_g"], D),
        "enc_ln2_b": rowvec(p["enc_ln2_b"], D),
        "dec_wq": pad2(p["dec_wq"] * scale, D, D).astype(bf16),
        "dec_wkv": dec_wkv.astype(bf16),
        "dec_wo": pad2(p["dec_wo"], D, D).astype(bf16),
        "dec_ln1_g": rowvec(p["dec_ln1_g"], D),
        "dec_ln1_b": rowvec(p["dec_ln1_b"], D),
        "dec_ffn1_w": pad2(p["dec_ffn1_w"], D, F).astype(bf16),
        "dec_ffn1_b": rowvec(p["dec_ffn1_b"], F),
        "dec_ffn2_w": pad2(p["dec_ffn2_w"], F, D).astype(bf16),
        "dec_ffn2_b": rowvec(p["dec_ffn2_b"], D),
        "dec_ln2_g": rowvec(p["dec_ln2_g"], D),
        "dec_ln2_b": rowvec(p["dec_ln2_b"], D),
        "head_w": head_w.astype(bf16),
        "head_b": head_b,
    }
    meta = {"d_model": d, "num_classes": num_classes, "c1": c1}
    return prep, meta


# ----------------------------------------------------------------------------
# DFINE forward: backbone -> encoder -> decoder
# ----------------------------------------------------------------------------
def dfine_forward(prep, x_nchw, *, meta):
    num_classes = meta["num_classes"]
    c1 = meta["c1"]
    d_model = meta["d_model"]
    batch = x_nchw.shape[0]

    # PyTorch NCHW input -> NHWC (bf16 activations for MXU/HBM efficiency).
    x = jnp.transpose(x_nchw, (0, 2, 3, 1)).astype(jnp.bfloat16)

    # ---- backbone: two 3x3 stride-2 convs (im2col + Pallas matmul+ReLU)
    p1 = im2col(x)                                        # (B, 8, 8, 36)
    _, h1, w1, f1 = p1.shape
    h = pallas_linear(p1.reshape(batch * h1 * w1, f1),
                      prep["conv1_w"], prep["conv1_b"],
                      act="relu", out_dtype=jnp.bfloat16)  # (n, 128) lane-dense
    h = h[:, :c1].reshape(batch, h1, w1, c1)              # back to real channels

    p2 = im2col(h)                                        # (B, 4, 4, 144)
    _, h2, w2, f2 = p2.shape
    feat = pallas_linear(p2.reshape(batch * h2 * w2, f2),
                         prep["conv2_w"], prep["conv2_b"],
                         act="relu", out_dtype=jnp.bfloat16)  # (n, 128)
    # Padded channels are zero and hit zero rows of enc_in_w -> feed directly.
    tokens = feat.reshape(batch, h2 * w2, -1)             # (B, 16, 128)

    # ---- fused encoder + decoder + heads (single Pallas call)
    head = pallas_dfine_transformer(tokens, prep["query_embed"], prep, d_model)

    logits = head[..., :num_classes]
    boxes = jax.nn.sigmoid(head[..., num_classes:num_classes + 4])
    return {"pred_logits": logits, "pred_boxes": boxes}


if __name__ == "__main__":
    key = jax.random.PRNGKey(0)
    kx, kp = jax.random.split(key)
    x = jax.random.normal(kx, (2, 4, 16, 16), dtype=jnp.float32)  # NCHW
    params = init_params(kp)

    # Weight prep hoisted out of the forward (runs once at setup).
    prep, meta = prepare_params(params)

    fwd = jax.jit(functools.partial(dfine_forward, meta=meta))
    out = jax.block_until_ready(fwd(prep, x))

    assert out["pred_logits"].shape == (2, 8, 4)
    assert out["pred_boxes"].shape == (2, 8, 4)
    assert bool(jnp.all(jnp.isfinite(out["pred_logits"])))
    assert bool(jnp.all((out["pred_boxes"] >= 0.0) & (out["pred_boxes"] <= 1.0)))
    print("KERNEL_OK")
</pallas_src>

<mosaic_0001>
module attributes {stable_mosaic.version = 11 : i64} {
  func.func @_linear_kernel(%arg0: i32, %arg1: memref<128x36xbf16, #tpu.memory_space<vmem>>, %arg2: memref<36x128xbf16, #tpu.memory_space<vmem>>, %arg3: memref<1x128xf32, #tpu.memory_space<vmem>>, %arg4: memref<128x128xbf16, #tpu.memory_space<vmem>>) attributes {dimension_semantics = [#tpu.dimension_semantics<parallel>], iteration_bounds = array<i64: 1>, scalar_prefetch = 0 : i64, scratch_operands = 0 : i64, tpu.core_type = #tpu.core_type<tc>, window_params = [{transform_indices = @transform_0, window_bounds = array<i64: 128, 36>}, {pipeline_mode = #tpu.pipeline_mode<synchronous>, transform_indices = @transform_1, window_bounds = array<i64: 36, 128>}, {pipeline_mode = #tpu.pipeline_mode<synchronous>, transform_indices = @transform_2, window_bounds = array<i64: 1, 128>}, {transform_indices = @transform_3, window_bounds = array<i64: 128, 128>}]} {
    %c0 = arith.constant 0 : index
    %c0_0 = arith.constant 0 : index
    %0 = vector.load %arg1[%c0, %c0_0] : memref<128x36xbf16, #tpu.memory_space<vmem>>, vector<128x36xbf16>
    %c0_1 = arith.constant 0 : index
    %c0_2 = arith.constant 0 : index
    %1 = vector.load %arg2[%c0_1, %c0_2] : memref<36x128xbf16, #tpu.memory_space<vmem>>, vector<36x128xbf16>
    %cst = arith.constant dense<0.000000e+00> : vector<128x128xf32>
    %2 = tpu.matmul %0, %1, %cst {dimension_numbers = #tpu.dot_dimension_numbers<[1], [0], [0], [1], [0, 0, 1, 1], [], []>} : vector<128x36xbf16>, vector<36x128xbf16>, vector<128x128xf32> -> vector<128x128xf32>
    %c0_3 = arith.constant 0 : index
    %c0_4 = arith.constant 0 : index
    %3 = vector.load %arg3[%c0_3, %c0_4] : memref<1x128xf32, #tpu.memory_space<vmem>>, vector<1x128xf32>
    %4 = vector.broadcast %3 : vector<1x128xf32> to vector<128x128xf32>
    %5 = arith.addf %2, %4 : vector<128x128xf32>
    %cst_5 = arith.constant 0.000000e+00 : f32
    %6 = vector.broadcast %cst_5 : f32 to vector<128x128xf32>
    %7 = arith.maximumf %5, %6 : vector<128x128xf32>
    %8 = arith.truncf %7 : vector<128x128xf32> to vector<128x128xbf16>
    %c0_6 = arith.constant 0 : index
    %c0_7 = arith.constant 0 : index
    %9 = vector.load %arg4[%c0_6, %c0_7] : memref<128x128xbf16, #tpu.memory_space<vmem>>, vector<128x128xbf16>
    tpu.vector_store %arg4[%c0_6, %c0_7], %8 {strides = array<i32>} : memref<128x128xbf16, #tpu.memory_space<vmem>>, vector<128x128xbf16>,
    return
  }
  func.func @transform_0(%arg0: i32) -> (i32, i32) {
    %c0_i32 = arith.constant 0 : i32
    %c0_i32_0 = arith.constant 0 : i32
    return %arg0, %c0_i32 : i32, i32
  }
  func.func @transform_1(%arg0: i32) -> (i32, i32) {
    %c0_i32 = arith.constant 0 : i32
    %c0_i32_0 = arith.constant 0 : i32
    %c0_i32_1 = arith.constant 0 : i32
    return %c0_i32, %c0_i32_0 : i32, i32
  }
  func.func @transform_2(%arg0: i32) -> (i32, i32) {
    %c0_i32 = arith.constant 0 : i32
    %c0_i32_0 = arith.constant 0 : i32
    %c0_i32_1 = arith.constant 0 : i32
    return %c0_i32, %c0_i32_0 : i32, i32
  }
  func.func @transform_3(%arg0: i32) -> (i32, i32) {
    %c0_i32 = arith.constant 0 : i32
    %c0_i32_0 = arith.constant 0 : i32
    return %arg0, %c0_i32 : i32, i32
  }
}

module attributes {stable_mosaic.version = 11 : i64} {
  func.func @_dfine_transformer_kernel(%arg0: i32, %arg1: memref<1x16x128xbf16, #tpu.memory_space<vmem>>, %arg2: memref<8x128xf32, #tpu.memory_space<vmem>>, %arg3: memref<128x128xbf16, #tpu.memory_space<vmem>>, %arg4: memref<1x128xf32, #tpu.memory_space<vmem>>, %arg5: memref<128x384xbf16, #tpu.memory_space<vmem>>, %arg6: memref<128x128xbf16, #tpu.memory_space<vmem>>, %arg7: memref<1x128xf32, #tpu.memory_space<vmem>>, %arg8: memref<1x128xf32, #tpu.memory_space<vmem>>, %arg9: memref<128x128xbf16, #tpu.memory_space<vmem>>, %arg10: memref<1x128xf32, #tpu.memory_space<vmem>>, %arg11: memref<128x128xbf16, #tpu.memory_space<vmem>>, %arg12: memref<1x128xf32, #tpu.memory_space<vmem>>, %arg13: memref<1x128xf32, #tpu.memory_space<vmem>>, %arg14: memref<1x128xf32, #tpu.memory_space<vmem>>, %arg15: memref<128x128xbf16, #tpu.memory_space<vmem>>, %arg16: memref<128x256xbf16, #tpu.memory_space<vmem>>, %arg17: memref<128x128xbf16, #tpu.memory_space<vmem>>, %arg18: memref<1x128xf32, #tpu.memory_space<vmem>>, %arg19: memref<1x128xf32, #tpu.memory_space<vmem>>, %arg20: memref<128x128xbf16, #tpu.memory_space<vmem>>, %arg21: memref<1x128xf32, #tpu.memory_space<vmem>>, %arg22: memref<128x128xbf16, #tpu.memory_space<vmem>>, %arg23: memref<1x128xf32, #tpu.memory_space<vmem>>, %arg24: memref<1x128xf32, #tpu.memory_space<vmem>>, %arg25: memref<1x128xf32, #tpu.memory_space<vmem>>, %arg26: memref<128x128xbf16, #tpu.memory_space<vmem>>, %arg27: memref<1x128xf32, #tpu.memory_space<vmem>>, %arg28: memref<1x8x128xf32, #tpu.memory_space<vmem>>) attributes {dimension_semantics = [#tpu.dimension_semantics<parallel>], iteration_bounds = array<i64: 2>, scalar_prefetch = 0 : i64, scratch_operands = 0 : i64, tpu.core_type = #tpu.core_type<tc>, window_params = [{transform_indices = @transform_0, window_bounds = array<i64: 1, 16, 128>}, {pipeline_mode = #tpu.pipeline_mode<synchronous>, transform_indices = @transform_1, window_bounds = array<i64: 8, 128>}, {pipeline_mode = #tpu.pipeline_mode<synchronous>, transform_indices = @transform_2, window_bounds = array<i64: 128, 128>}, {pipeline_mode = #tpu.pipeline_mode<synchronous>, transform_indices = @transform_3, window_bounds = array<i64: 1, 128>}, {pipeline_mode = #tpu.pipeline_mode<synchronous>, transform_indices = @transform_4, window_bounds = array<i64: 128, 384>}, {pipeline_mode = #tpu.pipeline_mode<synchronous>, transform_indices = @transform_5, window_bounds = array<i64: 128, 128>}, {pipeline_mode = #tpu.pipeline_mode<synchronous>, transform_indices = @transform_6, window_bounds = array<i64: 1, 128>}, {pipeline_mode = #tpu.pipeline_mode<synchronous>, transform_indices = @transform_7, window_bounds = array<i64: 1, 128>}, {pipeline_mode = #tpu.pipeline_mode<synchronous>, transform_indices = @transform_8, window_bounds = array<i64: 128, 128>}, {pipeline_mode = #tpu.pipeline_mode<synchronous>, transform_indices = @transform_9, window_bounds = array<i64: 1, 128>}, {pipeline_mode = #tpu.pipeline_mode<synchronous>, transform_indices = @transform_10, window_bounds = array<i64: 128, 128>}, {pipeline_mode = #tpu.pipeline_mode<synchronous>, transform_indices = @transform_11, window_bounds = array<i64: 1, 128>}, {pipeline_mode = #tpu.pipeline_mode<synchronous>, transform_indices = @transform_12, window_bounds = array<i64: 1, 128>}, {pipeline_mode = #tpu.pipeline_mode<synchronous>, transform_indices = @transform_13, window_bounds = array<i64: 1, 128>}, {pipeline_mode = #tpu.pipeline_mode<synchronous>, transform_indices = @transform_14, window_bounds = array<i64: 128, 128>}, {pipeline_mode = #tpu.pipeline_mode<synchronous>, transform_indices = @transform_15, window_bounds = array<i64: 128, 256>}, {pipeline_mode = #tpu.pipeline_mode<synchronous>, transform_indices = @transform_16, window_bounds = array<i64: 128, 128>}, {pipeline_mode = #tpu.pipeline_mode<synchronous>, transform_indices = @transform_17, window_bounds = array<i64: 1, 128>}, {pipeline_mode = #tpu.pipeline_mode<synchronous>, transform_indices = @transform_18, window_bounds = array<i64: 1, 128>}, {pipeline_mode = #tpu.pipeline_mode<synchronous>, transform_indices = @transform_19, window_bounds = array<i64: 128, 128>}, {pipeline_mode = #tpu.pipeline_mode<synchronous>, transform_indices = @transform_20, window_bounds = array<i64: 1, 128>}, {pipeline_mode = #tpu.pipeline_mode<synchronous>, transform_indices = @transform_21, window_bounds = array<i64: 128, 128>}, {pipeline_mode = #tpu.pipeline_mode<synchronous>, transform_indices = @transform_22, window_bounds = array<i64: 1, 128>}, {pipeline_mode = #tpu.pipeline_mode<synchronous>, transform_indices = @transform_23, window_bounds = array<i64: 1, 128>}, {pipeline_mode = #tpu.pipeline_mode<synchronous>, transform_indices = @transform_24, window_bounds = array<i64: 1, 128>}, {pipeline_mode = #tpu.pipeline_mode<synchronous>, transform_indices = @transform_25, window_bounds = array<i64: 128, 128>}, {pipeline_mode = #tpu.pipeline_mode<synchronous>, transform_indices = @transform_26, window_bounds = array<i64: 1, 128>}, {transform_indices = @transform_27, window_bounds = array<i64: 1, 8, 128>}]} {
    %c0 = arith.constant 0 : index
    %c0_0 = arith.constant 0 : index
    %c0_1 = arith.constant 0 : index
    %0 = vector.load %arg1[%c0, %c0_0, %c0_1] : memref<1x16x128xbf16, #tpu.memory_space<vmem>>, vector<1x16x128xbf16>
    %1 = vector.shape_cast %0 : vector<1x16x128xbf16> to vector<16x128xbf16>
    %c0_2 = arith.constant 0 : index
    %c0_3 = arith.constant 0 : index
    %2 = vector.load %arg3[%c0_2, %c0_3] : memref<128x128xbf16, #tpu.memory_space<vmem>>, vector<128x128xbf16>
    %cst = arith.constant dense<0.000000e+00> : vector<16x128xf32>
    %3 = tpu.matmul %1, %2, %cst {dimension_numbers = #tpu.dot_dimension_numbers<[1], [0], [0], [1], [0, 0, 1, 1], [], []>} : vector<16x128xbf16>, vector<128x128xbf16>, vector<16x128xf32> -> vector<16x128xf32>
    %c0_4 = arith.constant 0 : index
    %c0_5 = arith.constant 0 : index
    %4 = vector.load %arg4[%c0_4, %c0_5] : memref<1x128xf32, #tpu.memory_space<vmem>>, vector<1x128xf32>
    %5 = vector.broadcast %4 : vector<1x128xf32> to vector<16x128xf32>
    %6 = arith.addf %3, %5 : vector<16x128xf32>
    %c0_6 = arith.constant 0 : index
    %c0_7 = arith.constant 0 : index
    %7 = vector.load %arg5[%c0_6, %c0_7] : memref<128x384xbf16, #tpu.memory_space<vmem>>, vector<128x384xbf16>
    %8 = arith.truncf %6 : vector<16x128xf32> to vector<16x128xbf16>
    %cst_8 = arith.constant dense<0.000000e+00> : vector<16x384xf32>
    %9 = tpu.matmul %8, %7, %cst_8 {dimension_numbers = #tpu.dot_dimension_numbers<[1], [0], [0], [1], [0, 0, 1, 1], [], []>} : vector<16x128xbf16>, vector<128x384xbf16>, vector<16x384xf32> -> vector<16x384xf32>
    %10 = vector.extract_strided_slice %9 {offsets = [0, 0], sizes = [16, 128], strides = [1, 1]} : vector<16x384xf32> to vector<16x128xf32>
    %11 = vector.shape_cast %10 : vector<16x128xf32> to vector<1x16x128xf32>
    %12 = vector.extract_strided_slice %9 {offsets = [0, 128], sizes = [16, 128], strides = [1, 1]} : vector<16x384xf32> to vector<16x128xf32>
    %13 = vector.shape_cast %12 : vector<16x128xf32> to vector<1x16x128xf32>
    %14 = vector.extract_strided_slice %9 {offsets = [0, 256], sizes = [16, 128], strides = [1, 1]} : vector<16x384xf32> to vector<16x128xf32>
    %15 = vector.shape_cast %14 : vector<16x128xf32> to vector<1x16x128xf32>
    %16 = arith.truncf %11 : vector<1x16x128xf32> to vector<1x16x128xbf16>
    %17 = arith.truncf %13 : vector<1x16x128xf32> to vector<1x16x128xbf16>
    "tpu.trace_start"() <{level = 10 : i32, message = "bqd,bkd->bqk"}> : () -> ()
    %cst_9 = arith.constant dense<0.000000e+00> : vector<1x16x16xf32>
    %18 = tpu.matmul %16, %17, %cst_9 {dimension_numbers = #tpu.dot_dimension_numbers<[2], [2], [1], [1], [0, 0, 0, 1, 1, 1], [0], [0]>} : vector<1x16x128xbf16>, vector<1x16x128xbf16>, vector<1x16x16xf32> -> vector<1x16x16xf32>
    "tpu.trace_stop"() : () -> ()
    %cst_10 = arith.constant dense<0xFF800000> : vector<1x16xf32>
    %19 = vector.multi_reduction <maximumf>, %18, %cst_10 [2] : vector<1x16x16xf32> to vector<1x16xf32>
    %20 = vector.shape_cast %19 : vector<1x16xf32> to vector<1x16x1xf32>
    %21 = vector.broadcast %20 : vector<1x16x1xf32> to vector<1x16x16xf32>
    %22 = arith.subf %18, %21 : vector<1x16x16xf32>
    %23 = math.exp %22 : vector<1x16x16xf32>
    %cst_11 = arith.constant dense<0.000000e+00> : vector<1x16xf32>
    %24 = vector.multi_reduction <add>, %23, %cst_11 [2] : vector<1x16x16xf32> to vector<1x16xf32>
    %25 = vector.shape_cast %24 : vector<1x16xf32> to vector<1x16x1xf32>
    %26 = tpu.reciprocal %25 {approx = true} : vector<1x16x1xf32> -> vector<1x16x1xf32>
    %27 = vector.broadcast %26 : vector<1x16x1xf32> to vector<1x16x16xf32>
    %28 = arith.mulf %23, %27 : vector<1x16x16xf32>
    %29 = arith.truncf %28 : vector<1x16x16xf32> to vector<1x16x16xbf16>
    %30 = arith.truncf %15 : vector<1x16x128xf32> to vector<1x16x128xbf16>
    "tpu.trace_start"() <{level = 10 : i32, message = "bqk,bkd->bqd"}> : () -> ()
    %cst_12 = arith.constant dense<0.000000e+00> : vector<1x16x128xf32>
    %31 = tpu.matmul %29, %30, %cst_12 {dimension_numbers = #tpu.dot_dimension_numbers<[2], [1], [1], [2], [0, 0, 0, 1, 1, 2], [0], [0]>} : vector<1x16x16xbf16>, vector<1x16x128xbf16>, vector<1x16x128xf32> -> vector<1x16x128xf32>
    "tpu.trace_stop"() : () -> ()
    %32 = vector.shape_cast %31 : vector<1x16x128xf32> to vector<16x128xf32>
    %c0_13 = arith.constant 0 : index
    %c0_14 = arith.constant 0 : index
    %33 = vector.load %arg6[%c0_13, %c0_14] : memref<128x128xbf16, #tpu.memory_space<vmem>>, vector<128x128xbf16>
    %34 = arith.truncf %32 : vector<16x128xf32> to vector<16x128xbf16>
    %cst_15 = arith.constant dense<0.000000e+00> : vector<16x128xf32>
    %35 = tpu.matmul %34, %33, %cst_15 {dimension_numbers = #tpu.dot_dimension_numbers<[1], [0], [0], [1], [0, 0, 1, 1], [], []>} : vector<16x128xbf16>, vector<128x128xbf16>, vector<16x128xf32> -> vector<16x128xf32>
    %36 = arith.addf %6, %35 : vector<16x128xf32>
    %cst_16 = arith.constant dense<0.000000e+00> : vector<16xf32>
    %37 = vector.multi_reduction <add>, %36, %cst_16 [1] : vector<16x128xf32> to vector<16xf32>
    %38 = vector.shape_cast %37 : vector<16xf32> to vector<16x1xf32>
    %cst_17 = arith.constant 3.125000e-02 : f32
    %39 = vector.broadcast %cst_17 : f32 to vector<16x1xf32>
    %40 = arith.mulf %38, %39 : vector<16x1xf32>
    %41 = arith.mulf %36, %36 : vector<16x128xf32>
    %cst_18 = arith.constant dense<0.000000e+00> : vector<16xf32>
    %42 = vector.multi_reduction <add>, %41, %cst_18 [1] : vector<16x128xf32> to vector<16xf32>
    %43 = vector.shape_cast %42 : vector<16xf32> to vector<16x1xf32>
    %cst_19 = arith.constant 3.125000e-02 : f32
    %44 = vector.broadcast %cst_19 : f32 to vector<16x1xf32>
    %45 = arith.mulf %43, %44 : vector<16x1xf32>
    %46 = arith.mulf %40, %40 : vector<16x1xf32>
    %47 = arith.subf %45, %46 : vector<16x1xf32>
    %48 = vector.broadcast %40 : vector<16x1xf32> to vector<16x128xf32>
    %49 = arith.subf %36, %48 : vector<16x128xf32>
    %cst_20 = arith.constant 9.99999974E-6 : f32
    %50 = vector.broadcast %cst_20 : f32 to vector<16x1xf32>
    %51 = arith.addf %47, %50 : vector<16x1xf32>
    %52 = math.rsqrt %51 : vector<16x1xf32>
    %53 = vector.broadcast %52 : vector<16x1xf32> to vector<16x128xf32>
    %54 = arith.mulf %49, %53 : vector<16x128xf32>
    %c0_21 = arith.constant 0 : index
    %c0_22 = arith.constant 0 : index
    %55 = vector.load %arg7[%c0_21, %c0_22] : memref<1x128xf32, #tpu.memory_space<vmem>>, vector<1x128xf32>
    %56 = vector.broadcast %55 : vector<1x128xf32> to vector<16x128xf32>
    %57 = arith.mulf %54, %56 : vector<16x128xf32>
    %c0_23 = arith.constant 0 : index
    %c0_24 = arith.constant 0 : index
    %58 = vector.load %arg8[%c0_23, %c0_24] : memref<1x128xf32, #tpu.memory_space<vmem>>, vector<1x128xf32>
    %59 = vector.broadcast %58 : vector<1x128xf32> to vector<16x128xf32>
    %60 = arith.addf %57, %59 : vector<16x128xf32>
    %c0_25 = arith.constant 0 : index
    %c0_26 = arith.constant 0 : index
    %61 = vector.load %arg9[%c0_25, %c0_26] : memref<128x128xbf16, #tpu.memory_space<vmem>>, vector<128x128xbf16>
    %62 = arith.truncf %60 : vector<16x128xf32> to vector<16x128xbf16>
    %cst_27 = arith.constant dense<0.000000e+00> : vector<16x128xf32>
    %63 = tpu.matmul %62, %61, %cst_27 {dimension_numbers = #tpu.dot_dimension_numbers<[1], [0], [0], [1], [0, 0, 1, 1], [], []>} : vector<16x128xbf16>, vector<128x128xbf16>, vector<16x128xf32> -> vector<16x128xf32>
    %c0_28 = arith.constant 0 : index
    %c0_29 = arith.constant 0 : index
    %64 = vector.load %arg10[%c0_28, %c0_29] : memref<1x128xf32, #tpu.memory_space<vmem>>, vector<1x128xf32>
    %65 = vector.broadcast %64 : vector<1x128xf32> to vector<16x128xf32>
    %66 = arith.addf %63, %65 : vector<16x128xf32>
    %cst_30 = arith.constant 0.000000e+00 : f32
    %67 = vector.broadcast %cst_30 : f32 to vector<16x128xf32>
    %68 = arith.maximumf %66, %67 : vector<16x128xf32>
    %c0_31 = arith.constant 0 : index
    %c0_32 = arith.constant 0 : index
    %69 = vector.load %arg11[%c0_31, %c0_32] : memref<128x128xbf16, #tpu.memory_space<vmem>>, vector<128x128xbf16>
    %70 = arith.truncf %68 : vector<16x128xf32> to vector<16x128xbf16>
    %cst_33 = arith.constant dense<0.000000e+00> : vector<16x128xf32>
    %71 = tpu.matmul %70, %69, %cst_33 {dimension_numbers = #tpu.dot_dimension_numbers<[1], [0], [0], [1], [0, 0, 1, 1], [], []>} : vector<16x128xbf16>, vector<128x128xbf16>, vector<16x128xf32> -> vector<16x128xf32>
    %c0_34 = arith.constant 0 : index
    %c0_35 = arith.constant 0 : index
    %72 = vector.load %arg12[%c0_34, %c0_35] : memref<1x128xf32, #tpu.memory_space<vmem>>, vector<1x128xf32>
    %73 = vector.broadcast %72 : vector<1x128xf32> to vector<16x128xf32>
    %74 = arith.addf %71, %73 : vector<16x128xf32>
    %75 = arith.addf %60, %74 : vector<16x128xf32>
    %cst_36 = arith.constant dense<0.000000e+00> : vector<16xf32>
    %76 = vector.multi_reduction <add>, %75, %cst_36 [1] : vector<16x128xf32> to vector<16xf32>
    %77 = vector.shape_cast %76 : vector<16xf32> to vector<16x1xf32>
    %cst_37 = arith.constant 3.125000e-02 : f32
    %78 = vector.broadcast %cst_37 : f32 to vector<16x1xf32>
    %79 = arith.mulf %77, %78 : vector<16x1xf32>
    %80 = arith.mulf %75, %75 : vector<16x128xf32>
    %cst_38 = arith.constant dense<0.000000e+00> : vector<16xf32>
    %81 = vector.multi_reduction <add>, %80, %cst_38 [1] : vector<16x128xf32> to vector<16xf32>
    %82 = vector.shape_cast %81 : vector<16xf32> to vector<16x1xf32>
    %cst_39 = arith.constant 3.125000e-02 : f32
    %83 = vector.broadcast %cst_39 : f32 to vector<16x1xf32>
    %84 = arith.mulf %82, %83 : vector<16x1xf32>
    %85 = arith.mulf %79, %79 : vector<16x1xf32>
    %86 = arith.subf %84, %85 : vector<16x1xf32>
    %87 = vector.broadcast %79 : vector<16x1xf32> to vector<16x128xf32>
    %88 = arith.subf %75, %87 : vector<16x128xf32>
    %cst_40 = arith.constant 9.99999974E-6 : f32
    %89 = vector.broadcast %cst_40 : f32 to vector<16x1xf32>
    %90 = arith.addf %86, %89 : vector<16x1xf32>
    %91 = math.rsqrt %90 : vector<16x1xf32>
    %92 = vector.broadcast %91 : vector<16x1xf32> to vector<16x128xf32>
    %93 = arith.mulf %88, %92 : vector<16x128xf32>
    %c0_41 = arith.constant 0 : index
    %c0_42 = arith.constant 0 : index
    %94 = vector.load %arg13[%c0_41, %c0_42] : memref<1x128xf32, #tpu.memory_space<vmem>>, vector<1x128xf32>
    %95 = vector.broadcast %94 : vector<1x128xf32> to vector<16x128xf32>
    %96 = arith.mulf %93, %95 : vector<16x128xf32>
    %c0_43 = arith.constant 0 : index
    %c0_44 = arith.constant 0 : index
    %97 = vector.load %arg14[%c0_43, %c0_44] : memref<1x128xf32, #tpu.memory_space<vmem>>, vector<1x128xf32>
    %98 = vector.broadcast %97 : vector<1x128xf32> to vector<16x128xf32>
    %99 = arith.addf %96, %98 : vector<16x128xf32>
    %c0_45 = arith.constant 0 : index
    %c0_46 = arith.constant 0 : index
    %100 = vector.load %arg2[%c0_45, %c0_46] : memref<8x128xf32, #tpu.memory_space<vmem>>, vector<8x128xf32>
    %c0_47 = arith.constant 0 : index
    %c0_48 = arith.constant 0 : index
    %101 = vector.load %arg15[%c0_47, %c0_48] : memref<128x128xbf16, #tpu.memory_space<vmem>>, vector<128x128xbf16>
    %102 = arith.truncf %100 : vector<8x128xf32> to vector<8x128xbf16>
    %cst_49 = arith.constant dense<0.000000e+00> : vector<8x128xf32>
    %103 = tpu.matmul %102, %101, %cst_49 {dimension_numbers = #tpu.dot_dimension_numbers<[1], [0], [0], [1], [0, 0, 1, 1], [], []>} : vector<8x128xbf16>, vector<128x128xbf16>, vector<8x128xf32> -> vector<8x128xf32>
    %c0_50 = arith.constant 0 : index
    %c0_51 = arith.constant 0 : index
    %104 = vector.load %arg16[%c0_50, %c0_51] : memref<128x256xbf16, #tpu.memory_space<vmem>>, vector<128x256xbf16>
    %105 = arith.truncf %99 : vector<16x128xf32> to vector<16x128xbf16>
    %cst_52 = arith.constant dense<0.000000e+00> : vector<16x256xf32>
    %106 = tpu.matmul %105, %104, %cst_52 {dimension_numbers = #tpu.dot_dimension_numbers<[1], [0], [0], [1], [0, 0, 1, 1], [], []>} : vector<16x128xbf16>, vector<128x256xbf16>, vector<16x256xf32> -> vector<16x256xf32>
    %107 = vector.extract_strided_slice %106 {offsets = [0, 0], sizes = [16, 128], strides = [1, 1]} : vector<16x256xf32> to vector<16x128xf32>
    %108 = vector.shape_cast %107 : vector<16x128xf32> to vector<1x16x128xf32>
    %109 = vector.extract_strided_slice %106 {offsets = [0, 128], sizes = [16, 128], strides = [1, 1]} : vector<16x256xf32> to vector<16x128xf32>
    %110 = vector.shape_cast %109 : vector<16x128xf32> to vector<1x16x128xf32>
    %111 = vector.shape_cast %103 : vector<8x128xf32> to vector<1x8x128xf32>
    %112 = arith.truncf %111 : vector<1x8x128xf32> to vector<1x8x128xbf16>
    %113 = arith.truncf %108 : vector<1x16x128xf32> to vector<1x16x128xbf16>
    "tpu.trace_start"() <{level = 10 : i32, message = "bqd,bkd->bqk"}> : () -> ()
    %cst_53 = arith.constant dense<0.000000e+00> : vector<1x8x16xf32>
    %114 = tpu.matmul %112, %113, %cst_53 {dimension_numbers = #tpu.dot_dimension_numbers<[2], [2], [1], [1], [0, 0, 0, 1, 1, 1], [0], [0]>} : vector<1x8x128xbf16>, vector<1x16x128xbf16>, vector<1x8x16xf32> -> vector<1x8x16xf32>
    "tpu.trace_stop"() : () -> ()
    %cst_54 = arith.constant dense<0xFF800000> : vector<1x8xf32>
    %115 = vector.multi_reduction <maximumf>, %114, %cst_54 [2] : vector<1x8x16xf32> to vector<1x8xf32>
    %116 = vector.shape_cast %115 : vector<1x8xf32> to vector<1x8x1xf32>
    %117 = vector.broadcast %116 : vector<1x8x1xf32> to vector<1x8x16xf32>
    %118 = arith.subf %114, %117 : vector<1x8x16xf32>
    %119 = math.exp %118 : vector<1x8x16xf32>
    %cst_55 = arith.constant dense<0.000000e+00> : vector<1x8xf32>
    %120 = vector.multi_reduction <add>, %119, %cst_55 [2] : vector<1x8x16xf32> to vector<1x8xf32>
    %121 = vector.shape_cast %120 : vector<1x8xf32> to vector<1x8x1xf32>
    %122 = tpu.reciprocal %121 {approx = true} : vector<1x8x1xf32> -> vector<1x8x1xf32>
    %123 = vector.broadcast %122 : vector<1x8x1xf32> to vector<1x8x16xf32>
    %124 = arith.mulf %119, %123 : vector<1x8x16xf32>
    %125 = arith.truncf %124 : vector<1x8x16xf32> to vector<1x8x16xbf16>
    %126 = arith.truncf %110 : vector<1x16x128xf32> to vector<1x16x128xbf16>
    "tpu.trace_start"() <{level = 10 : i32, message = "bqk,bkd->bqd"}> : () -> ()
    %cst_56 = arith.constant dense<0.000000e+00> : vector<1x8x128xf32>
    %127 = tpu.matmul %125, %126, %cst_56 {dimension_numbers = #tpu.dot_dimension_numbers<[2], [1], [1], [2], [0, 0, 0, 1, 1, 2], [0], [0]>} : vector<1x8x16xbf16>, vector<1x16x128xbf16>, vector<1x8x128xf32> -> vector<1x8x128xf32>
    "tpu.trace_stop"() : () -> ()
    %128 = vector.shape_cast %127 : vector<1x8x128xf32> to vector<8x128xf32>
    %c0_57 = arith.constant 0 : index
    %c0_58 = arith.constant 0 : index
    %129 = vector.load %arg17[%c0_57, %c0_58] : memref<128x128xbf16, #tpu.memory_space<vmem>>, vector<128x128xbf16>
    %130 = arith.truncf %128 : vector<8x128xf32> to vector<8x128xbf16>
    %cst_59 = arith.constant dense<0.000000e+00> : vector<8x128xf32>
    %131 = tpu.matmul %130, %129, %cst_59 {dimension_numbers = #tpu.dot_dimension_numbers<[1], [0], [0], [1], [0, 0, 1, 1], [], []>} : vector<8x128xbf16>, vector<128x128xbf16>, vector<8x128xf32> -> vector<8x128xf32>
    %132 = vector.shape_cast %100 : vector<8x128xf32> to vector<1x8x128xf32>
    %133 = vector.shape_cast %132 : vector<1x8x128xf32> to vector<8x128xf32>
    %134 = arith.addf %133, %131 : vector<8x128xf32>
    %cst_60 = arith.constant dense<0.000000e+00> : vector<8xf32>
    %135 = vector.multi_reduction <add>, %134, %cst_60 [1] : vector<8x128xf32> to vector<8xf32>
    %136 = vector.shape_cast %135 : vector<8xf32> to vector<8x1xf32>
    %cst_61 = arith.constant 3.125000e-02 : f32
    %137 = vector.broadcast %cst_61 : f32 to vector<8x1xf32>
    %138 = arith.mulf %136, %137 : vector<8x1xf32>
    %139 = arith.mulf %134, %134 : vector<8x128xf32>
    %cst_62 = arith.constant dense<0.000000e+00> : vector<8xf32>
    %140 = vector.multi_reduction <add>, %139, %cst_62 [1] : vector<8x128xf32> to vector<8xf32>
    %141 = vector.shape_cast %140 : vector<8xf32> to vector<8x1xf32>
    %cst_63 = arith.constant 3.125000e-02 : f32
    %142 = vector.broadcast %cst_63 : f32 to vector<8x1xf32>
    %143 = arith.mulf %141, %142 : vector<8x1xf32>
    %144 = arith.mulf %138, %138 : vector<8x1xf32>
    %145 = arith.subf %143, %144 : vector<8x1xf32>
    %146 = vector.broadcast %138 : vector<8x1xf32> to vector<8x128xf32>
    %147 = arith.subf %134, %146 : vector<8x128xf32>
    %cst_64 = arith.constant 9.99999974E-6 : f32
    %148 = vector.broadcast %cst_64 : f32 to vector<8x1xf32>
    %149 = arith.addf %145, %148 : vector<8x1xf32>
    %150 = math.rsqrt %149 : vector<8x1xf32>
    %151 = vector.broadcast %150 : vector<8x1xf32> to vector<8x128xf32>
    %152 = arith.mulf %147, %151 : vector<8x128xf32>
    %c0_65 = arith.constant 0 : index
    %c0_66 = arith.constant 0 : index
    %153 = vector.load %arg18[%c0_65, %c0_66] : memref<1x128xf32, #tpu.memory_space<vmem>>, vector<1x128xf32>
    %154 = vector.broadcast %153 : vector<1x128xf32> to vector<8x128xf32>
    %155 = arith.mulf %152, %154 : vector<8x128xf32>
    %c0_67 = arith.constant 0 : index
    %c0_68 = arith.constant 0 : index
    %156 = vector.load %arg19[%c0_67, %c0_68] : memref<1x128xf32, #tpu.memory_space<vmem>>, vector<1x128xf32>
    %157 = vector.broadcast %156 : vector<1x128xf32> to vector<8x128xf32>
    %158 = arith.addf %155, %157 : vector<8x128xf32>
    %c0_69 = arith.constant 0 : index
    %c0_70 = arith.constant 0 : index
    %159 = vector.load %arg20[%c0_69, %c0_70] : memref<128x128xbf16, #tpu.memory_space<vmem>>, vector<128x128xbf16>
    %160 = arith.truncf %158 : vector<8x128xf32> to vector<8x128xbf16>
    %cst_71 = arith.constant dense<0.000000e+00> : vector<8x128xf32>
    %161 = tpu.matmul %160, %159, %cst_71 {dimension_numbers = #tpu.dot_dimension_numbers<[1], [0], [0], [1], [0, 0, 1, 1], [], []>} : vector<8x128xbf16>, vector<128x128xbf16>, vector<8x128xf32> -> vector<8x128xf32>
    %c0_72 = arith.constant 0 : index
    %c0_73 = arith.constant 0 : index
    %162 = vector.load %arg21[%c0_72, %c0_73] : memref<1x128xf32, #tpu.memory_space<vmem>>, vector<1x128xf32>
    %163 = vector.broadcast %162 : vector<1x128xf32> to vector<8x128xf32>
    %164 = arith.addf %161, %163 : vector<8x128xf32>
    %cst_74 = arith.constant 0.000000e+00 : f32
    %165 = vector.broadcast %cst_74 : f32 to vector<8x128xf32>
    %166 = arith.maximumf %164, %165 : vector<8x128xf32>
    %c0_75 = arith.constant 0 : index
    %c0_76 = arith.constant 0 : index
    %167 = vector.load %arg22[%c0_75, %c0_76] : memref<128x128xbf16, #tpu.memory_space<vmem>>, vector<128x128xbf16>
    %168 = arith.truncf %166 : vector<8x128xf32> to vector<8x128xbf16>
    %cst_77 = arith.constant dense<0.000000e+00> : vector<8x128xf32>
    %169 = tpu.matmul %168, %167, %cst_77 {dimension_numbers = #tpu.dot_dimension_numbers<[1], [0], [0], [1], [0, 0, 1, 1], [], []>} : vector<8x128xbf16>, vector<128x128xbf16>, vector<8x128xf32> -> vector<8x128xf32>
    %c0_78 = arith.constant 0 : index
    %c0_79 = arith.constant 0 : index
    %170 = vector.load %arg23[%c0_78, %c0_79] : memref<1x128xf32, #tpu.memory_space<vmem>>, vector<1x128xf32>
    %171 = vector.broadcast %170 : vector<1x128xf32> to vector<8x128xf32>
    %172 = arith.addf %169, %171 : vector<8x128xf32>
    %173 = arith.addf %158, %172 : vector<8x128xf32>
    %cst_80 = arith.constant dense<0.000000e+00> : vector<8xf32>
    %174 = vector.multi_reduction <add>, %173, %cst_80 [1] : vector<8x128xf32> to vector<8xf32>
    %175 = vector.shape_cast %174 : vector<8xf32> to vector<8x1xf32>
    %cst_81 = arith.constant 3.125000e-02 : f32
    %176 = vector.broadcast %cst_81 : f32 to vector<8x1xf32>
    %177 = arith.mulf %175, %176 : vector<8x1xf32>
    %178 = arith.mulf %173, %173 : vector<8x128xf32>
    %cst_82 = arith.constant dense<0.000000e+00> : vector<8xf32>
    %179 = vector.multi_reduction <add>, %178, %cst_82 [1] : vector<8x128xf32> to vector<8xf32>
    %180 = vector.shape_cast %179 : vector<8xf32> to vector<8x1xf32>
    %cst_83 = arith.constant 3.125000e-02 : f32
    %181 = vector.broadcast %cst_83 : f32 to vector<8x1xf32>
    %182 = arith.mulf %180, %181 : vector<8x1xf32>
    %183 = arith.mulf %177, %177 : vector<8x1xf32>
    %184 = arith.subf %182, %183 : vector<8x1xf32>
    %185 = vector.broadcast %177 : vector<8x1xf32> to vector<8x128xf32>
    %186 = arith.subf %173, %185 : vector<8x128xf32>
    %cst_84 = arith.constant 9.99999974E-6 : f32
    %187 = vector.broadcast %cst_84 : f32 to vector<8x1xf32>
    %188 = arith.addf %184, %187 : vector<8x1xf32>
    %189 = math.rsqrt %188 : vector<8x1xf32>
    %190 = vector.broadcast %189 : vector<8x1xf32> to vector<8x128xf32>
    %191 = arith.mulf %186, %190 : vector<8x128xf32>
    %c0_85 = arith.constant 0 : index
    %c0_86 = arith.constant 0 : index
    %192 = vector.load %arg24[%c0_85, %c0_86] : memref<1x128xf32, #tpu.memory_space<vmem>>, vector<1x128xf32>
    %193 = vector.broadcast %192 : vector<1x128xf32> to vector<8x128xf32>
    %194 = arith.mulf %191, %193 : vector<8x128xf32>
    %c0_87 = arith.constant 0 : index
    %c0_88 = arith.constant 0 : index
    %195 = vector.load %arg25[%c0_87, %c0_88] : memref<1x128xf32, #tpu.memory_space<vmem>>, vector<1x128xf32>
    %196 = vector.broadcast %195 : vector<1x128xf32> to vector<8x128xf32>
    %197 = arith.addf %194, %196 : vector<8x128xf32>
    %c0_89 = arith.constant 0 : index
    %c0_90 = arith.constant 0 : index
    %198 = vector.load %arg26[%c0_89, %c0_90] : memref<128x128xbf16, #tpu.memory_space<vmem>>, vector<128x128xbf16>
    %199 = arith.truncf %197 : vector<8x128xf32> to vector<8x128xbf16>
    %cst_91 = arith.constant dense<0.000000e+00> : vector<8x128xf32>
    %200 = tpu.matmul %199, %198, %cst_91 {dimension_numbers = #tpu.dot_dimension_numbers<[1], [0], [0], [1], [0, 0, 1, 1], [], []>} : vector<8x128xbf16>, vector<128x128xbf16>, vector<8x128xf32> -> vector<8x128xf32>
    %c0_92 = arith.constant 0 : index
    %c0_93 = arith.constant 0 : index
    %201 = vector.load %arg27[%c0_92, %c0_93] : memref<1x128xf32, #tpu.memory_space<vmem>>, vector<1x128xf32>
    %202 = vector.broadcast %201 : vector<1x128xf32> to vector<8x128xf32>
    %203 = arith.addf %200, %202 : vector<8x128xf32>
    %204 = vector.shape_cast %203 : vector<8x128xf32> to vector<1x8x128xf32>
    %c0_94 = arith.constant 0 : index
    %c0_95 = arith.constant 0 : index
    %c0_96 = arith.constant 0 : index
    %205 = vector.load %arg28[%c0_94, %c0_95, %c0_96] : memref<1x8x128xf32, #tpu.memory_space<vmem>>, vector<1x8x128xf32>
    tpu.vector_store %arg28[%c0_94, %c0_95, %c0_96], %204 {strides = array<i32>} : memref<1x8x128xf32, #tpu.memory_space<vmem>>, vector<1x8x128xf32>,
    return
  }
  func.func @transform_0(%arg0: i32) -> (i32, i32, i32) {
    %c0_i32 = arith.constant 0 : i32
    %c0_i32_0 = arith.constant 0 : i32
    %c0_i32_1 = arith.constant 0 : i32
    return %arg0, %c0_i32, %c0_i32_0 : i32, i32, i32
  }
  func.func @transform_1(%arg0: i32) -> (i32, i32) {
    %c0_i32 = arith.constant 0 : i32
    %c0_i32_0 = arith.constant 0 : i32
    %c0_i32_1 = arith.constant 0 : i32
    return %c0_i32, %c0_i32_0 : i32, i32
  }
  func.func @transform_2(%arg0: i32) -> (i32, i32) {
    %c0_i32 = arith.constant 0 : i32
    %c0_i32_0 = arith.constant 0 : i32
    %c0_i32_1 = arith.constant 0 : i32
    return %c0_i32, %c0_i32_0 : i32, i32
  }
  func.func @transform_3(%arg0: i32) -> (i32, i32) {
    %c0_i32 = arith.constant 0 : i32
    %c0_i32_0 = arith.constant 0 : i32
    %c0_i32_1 = arith.constant 0 : i32
    return %c0_i32, %c0_i32_0 : i32, i32
  }
  func.func @transform_4(%arg0: i32) -> (i32, i32) {
    %c0_i32 = arith.constant 0 : i32
    %c0_i32_0 = arith.constant 0 : i32
    %c0_i32_1 = arith.constant 0 : i32
    return %c0_i32, %c0_i32_0 : i32, i32
  }
  func.func @transform_5(%arg0: i32) -> (i32, i32) {
    %c0_i32 = arith.constant 0 : i32
    %c0_i32_0 = arith.constant 0 : i32
    %c0_i32_1 = arith.constant 0 : i32
    return %c0_i32, %c0_i32_0 : i32, i32
  }
  func.func @transform_6(%arg0: i32) -> (i32, i32) {
    %c0_i32 = arith.constant 0 : i32
    %c0_i32_0 = arith.constant 0 : i32
    %c0_i32_1 = arith.constant 0 : i32
    return %c0_i32, %c0_i32_0 : i32, i32
  }
  func.func @transform_7(%arg0: i32) -> (i32, i32) {
    %c0_i32 = arith.constant 0 : i32
    %c0_i32_0 = arith.constant 0 : i32
    %c0_i32_1 = arith.constant 0 : i32
    return %c0_i32, %c0_i32_0 : i32, i32
  }
  func.func @transform_8(%arg0: i32) -> (i32, i32) {
    %c0_i32 = arith.constant 0 : i32
    %c0_i32_0 = arith.constant 0 : i32
    %c0_i32_1 = arith.constant 0 : i32
    return %c0_i32, %c0_i32_0 : i32, i32
  }
  func.func @transform_9(%arg0: i32) -> (i32, i32) {
    %c0_i32 = arith.constant 0 : i32
    %c0_i32_0 = arith.constant 0 : i32
    %c0_i32_1 = arith.constant 0 : i32
    return %c0_i32, %c0_i32_0 : i32, i32
  }
  func.func @transform_10(%arg0: i32) -> (i32, i32) {
    %c0_i32 = arith.constant 0 : i32
    %c0_i32_0 = arith.constant 0 : i32
    %c0_i32_1 = arith.constant 0 : i32
    return %c0_i32, %c0_i32_0 : i32, i32
  }
  func.func @transform_11(%arg0: i32) -> (i32, i32) {
    %c0_i32 = arith.constant 0 : i32
    %c0_i32_0 = arith.constant 0 : i32
    %c0_i32_1 = arith.constant 0 : i32
    return %c0_i32, %c0_i32_0 : i32, i32
  }
  func.func @transform_12(%arg0: i32) -> (i32, i32) {
    %c0_i32 = arith.constant 0 : i32
    %c0_i32_0 = arith.constant 0 : i32
    %c0_i32_1 = arith.constant 0 : i32
    return %c0_i32, %c0_i32_0 : i32, i32
  }
  func.func @transform_13(%arg0: i32) -> (i32, i32) {
    %c0_i32 = arith.constant 0 : i32
    %c0_i32_0 = arith.constant 0 : i32
    %c0_i32_1 = arith.constant 0 : i32
    return %c0_i32, %c0_i32_0 : i32, i32
  }
  func.func @transform_14(%arg0: i32) -> (i32, i32) {
    %c0_i32 = arith.constant 0 : i32
    %c0_i32_0 = arith.constant 0 : i32
    %c0_i32_1 = arith.constant 0 : i32
    return %c0_i32, %c0_i32_0 : i32, i32
  }
  func.func @transform_15(%arg0: i32) -> (i32, i32) {
    %c0_i32 = arith.constant 0 : i32
    %c0_i32_0 = arith.constant 0 : i32
    %c0_i32_1 = arith.constant 0 : i32
    return %c0_i32, %c0_i32_0 : i32, i32
  }
  func.func @transform_16(%arg0: i32) -> (i32, i32) {
    %c0_i32 = arith.constant 0 : i32
    %c0_i32_0 = arith.constant 0 : i32
    %c0_i32_1 = arith.constant 0 : i32
    return %c0_i32, %c0_i32_0 : i32, i32
  }
  func.func @transform_17(%arg0: i32) -> (i32, i32) {
    %c0_i32 = arith.constant 0 : i32
    %c0_i32_0 = arith.constant 0 : i32
    %c0_i32_1 = arith.constant 0 : i32
    return %c0_i32, %c0_i32_0 : i32, i32
  }
  func.func @transform_18(%arg0: i32) -> (i32, i32) {
    %c0_i32 = arith.constant 0 : i32
    %c0_i32_0 = arith.constant 0 : i32
    %c0_i32_1 = arith.constant 0 : i32
    return %c0_i32, %c0_i32_0 : i32, i32
  }
  func.func @transform_19(%arg0: i32) -> (i32, i32) {
    %c0_i32 = arith.constant 0 : i32
    %c0_i32_0 = arith.constant 0 : i32
    %c0_i32_1 = arith.constant 0 : i32
    return %c0_i32, %c0_i32_0 : i32, i32
  }
  func.func @transform_20(%arg0: i32) -> (i32, i32) {
    %c0_i32 = arith.constant 0 : i32
    %c0_i32_0 = arith.constant 0 : i32
    %c0_i32_1 = arith.constant 0 : i32
    return %c0_i32, %c0_i32_0 : i32, i32
  }
  func.func @transform_21(%arg0: i32) -> (i32, i32) {
    %c0_i32 = arith.constant 0 : i32
    %c0_i32_0 = arith.constant 0 : i32
    %c0_i32_1 = arith.constant 0 : i32
    return %c0_i32, %c0_i32_0 : i32, i32
  }
  func.func @transform_22(%arg0: i32) -> (i32, i32) {
    %c0_i32 = arith.constant 0 : i32
    %c0_i32_0 = arith.constant 0 : i32
    %c0_i32_1 = arith.constant 0 : i32
    return %c0_i32, %c0_i32_0 : i32, i32
  }
  func.func @transform_23(%arg0: i32) -> (i32, i32) {
    %c0_i32 = arith.constant 0 : i32
    %c0_i32_0 = arith.constant 0 : i32
    %c0_i32_1 = arith.constant 0 : i32
    return %c0_i32, %c0_i32_0 : i32, i32
  }
  func.func @transform_24(%arg0: i32) -> (i32, i32) {
    %c0_i32 = arith.constant 0 : i32
    %c0_i32_0 = arith.constant 0 : i32
    %c0_i32_1 = arith.constant 0 : i32
    return %c0_i32, %c0_i32_0 : i32, i32
  }
  func.func @transform_25(%arg0: i32) -> (i32, i32) {
    %c0_i32 = arith.constant 0 : i32
    %c0_i32_0 = arith.constant 0 : i32
    %c0_i32_1 = arith.constant 0 : i32
    return %c0_i32, %c0_i32_0 : i32, i32
  }
  func.func @transform_26(%arg0: i32) -> (i32, i32) {
    %c0_i32 = arith.constant 0 : i32
    %c0_i32_0 = arith.constant 0 : i32
    %c0_i32_1 = arith.constant 0 : i32
    return %c0_i32, %c0_i32_0 : i32, i32
  }
  func.func @transform_27(%arg0: i32) -> (i32, i32, i32) {
    %c0_i32 = arith.constant 0 : i32
    %c0_i32_0 = arith.constant 0 : i32
    %c0_i32_1 = arith.constant 0 : i32
    return %arg0, %c0_i32, %c0_i32_0 : i32, i32, i32
  }
}

module attributes {stable_mosaic.version = 11 : i64} {
  func.func @_linear_kernel(%arg0: i32, %arg1: memref<32x144xbf16, #tpu.memory_space<vmem>>, %arg2: memref<144x128xbf16, #tpu.memory_space<vmem>>, %arg3: memref<1x128xf32, #tpu.memory_space<vmem>>, %arg4: memref<32x128xbf16, #tpu.memory_space<vmem>>) attributes {dimension_semantics = [#tpu.dimension_semantics<parallel>], iteration_bounds = array<i64: 1>, scalar_prefetch = 0 : i64, scratch_operands = 0 : i64, tpu.core_type = #tpu.core_type<tc>, window_params = [{transform_indices = @transform_0, window_bounds = array<i64: 32, 144>}, {pipeline_mode = #tpu.pipeline_mode<synchronous>, transform_indices = @transform_1, window_bounds = array<i64: 144, 128>}, {pipeline_mode = #tpu.pipeline_mode<synchronous>, transform_indices = @transform_2, window_bounds = array<i64: 1, 128>}, {transform_indices = @transform_3, window_bounds = array<i64: 32, 128>}]} {
    %c0 = arith.constant 0 : index
    %c0_0 = arith.constant 0 : index
    %0 = vector.load %arg1[%c0, %c0_0] : memref<32x144xbf16, #tpu.memory_space<vmem>>, vector<32x144xbf16>
    %c0_1 = arith.constant 0 : index
    %c0_2 = arith.constant 0 : index
    %1 = vector.load %arg2[%c0_1, %c0_2] : memref<144x128xbf16, #tpu.memory_space<vmem>>, vector<144x128xbf16>
    %cst = arith.constant dense<0.000000e+00> : vector<32x128xf32>
    %2 = tpu.matmul %0, %1, %cst {dimension_numbers = #tpu.dot_dimension_numbers<[1], [0], [0], [1], [0, 0, 1, 1], [], []>} : vector<32x144xbf16>, vector<144x128xbf16>, vector<32x128xf32> -> vector<32x128xf32>
    %c0_3 = arith.constant 0 : index
    %c0_4 = arith.constant 0 : index
    %3 = vector.load %arg3[%c0_3, %c0_4] : memref<1x128xf32, #tpu.memory_space<vmem>>, vector<1x128xf32>
    %4 = vector.broadcast %3 : vector<1x128xf32> to vector<32x128xf32>
    %5 = arith.addf %2, %4 : vector<32x128xf32>
    %cst_5 = arith.constant 0.000000e+00 : f32
    %6 = vector.broadcast %cst_5 : f32 to vector<32x128xf32>
    %7 = arith.maximumf %5, %6 : vector<32x128xf32>
    %8 = arith.truncf %7 : vector<32x128xf32> to vector<32x128xbf16>
    %c0_6 = arith.constant 0 : index
    %c0_7 = arith.constant 0 : index
    %9 = vector.load %arg4[%c0_6, %c0_7] : memref<32x128xbf16, #tpu.memory_space<vmem>>, vector<32x128xbf16>
    tpu.vector_store %arg4[%c0_6, %c0_7], %8 {strides = array<i32>} : memref<32x128xbf16, #tpu.memory_space<vmem>>, vector<32x128xbf16>,
    return
  }
  func.func @transform_0(%arg0: i32) -> (i32, i32) {
    %c0_i32 = arith.constant 0 : i32
    %c0_i32_0 = arith.constant 0 : i32
    return %arg0, %c0_i32 : i32, i32
  }
  func.func @transform_1(%arg0: i32) -> (i32, i32) {
    %c0_i32 = arith.constant 0 : i32
    %c0_i32_0 = arith.constant 0 : i32
    %c0_i32_1 = arith.constant 0 : i32
    return %c0_i32, %c0_i32_0 : i32, i32
  }
  func.func @transform_2(%arg0: i32) -> (i32, i32) {
    %c0_i32 = arith.constant 0 : i32
    %c0_i32_0 = arith.constant 0 : i32
    %c0_i32_1 = arith.constant 0 : i32
    return %c0_i32, %c0_i32_0 : i32, i32
  }
  func.func @transform_3(%arg0: i32) -> (i32, i32) {
    %c0_i32 = arith.constant 0 : i32
    %c0_i32_0 = arith.constant 0 : i32
    return %arg0, %c0_i32 : i32, i32
  }
}

</mosaic_0001>

<bundles_post_ra>
// kernel: dfine_forward.3
= control target key start
LH: loop header
LB: loop body
LE: loop exit
PB: predicated region body
PF: predicated region fallthrough
CT: control target
= control target key end

     0   :  { %vm98_vm0 = vcmask 293888   ;;  %vm123_vm1 = vcmask 1041408   ;;  %s563_s1 = inlined_call_operand.vmem [shape: bf16[36,128], index: 1, kind: input, shape index: {}]   ;;  %s564_s0 = inlined_call_operand.vmem [shape: bf16[128,36], index: 0, kind: input, shape index: {}]   ;;  %s565_s2 = inlined_call_operand.vmem [shape: f32[1,128], index: 2, kind: input, shape index: {}]   ;;  %s566_s3 = inlined_call_operand.vmem [shape: bf16[128,128], index: 3, kind: output, shape index: {}]  }
   0x1   :  { %v464_v0 = vld [vmem:[%s563_s1] sm:$0xff]   ;;  %v465_v1 = vld [vmem:[%s563_s1 + $0x8] sm:$0xff]   ;;  %v466_v2 = vld [vmem:[%s563_s1 + $0x10] ss:$0 sps:$4 sm:$0x33]  }
   0x2   :  { %434 = vmatprep.subr.bf16.mxu0 %v464_v0  ;;  %456 = vmatprep.subr.bf16.mxu1 %v464_v0  ;;  %v467_v3 = vld [vmem:[%s564_s0] sm:$0xff]   ;;  %v125_v5 = vsel %vm123_vm1, %v466_v2, 0  ;;  %v469_v6 = vld [vmem:[%s564_s0 + $0x8] sm:$0xff]   ;;  %v471_v8 = vld [vmem:[%s564_s0 + $0x10] sm:$0xff]  }
   0x3   :  { %435 = vmatpush3.bf16.msra.mxu0 %v464_v0  ;;  %459 = vmatpush3.bf16.msra.mxu1 %v464_v0  ;;  %v468_v4 = vld [vmem:[%s564_s0 + $0x20] sm:$0xff]   ;;  %v470_v7 = vld [vmem:[%s564_s0 + $0x28] sm:$0xff]   ;;  %v472_v9 = vld [vmem:[%s564_s0 + $0x30] sm:$0xff]  }
   0x4   :  { %436 = vmatprep.subr.bf16.mxu0 %v465_v1  ;;  %457 = vmatprep.subr.bf16.mxu1 %v465_v1  ;;  %v473_v10 = vld [vmem:[%s564_s0 + $0x18] sm:$0xff]   ;;  %v324_v12 = vld [vmem:[%s565_s2] ss:$0 sm:$0xff] }
   0x5   :  { %440 = vmatprep.mubr.msk.bf16.mxu0 %vm98_vm0, %v467_v3  ;;  %448 = vmatprep.mubr.msk.bf16.mxu1 %vm98_vm0, %v468_v4  ;;  %v474_v11 = vld [vmem:[%s564_s0 + $0x38] sm:$0xff]  }
   0x7   :  { %437 = vmatpush3.bf16.msra.mxu0 %v465_v1  ;;  %460 = vmatpush3.bf16.msra.mxu1 %v465_v1 }
   0x8   :  { %462 = vmatprep.subr.msk.bf16.mxu0 %vm123_vm1, %v466_v2  ;;  %463 = vmatprep.subr.msk.bf16.mxu1 %vm123_vm1, %v466_v2 }
   0xb   :  { %439 = vmatpush3.bf16.msra.mxu0 %v125_v5  ;;  %461 = vmatpush3.bf16.msra.mxu1 %v125_v5 }
   0xe   :  { %441 = vmatmul.mubr.msk.bf16.vlgmr.msra.gmra.mrb[0].mxu0 %vm98_vm0, %v469_v6  ;;  %449 = vmatmul.mubr.msk.bf16.vlgmr.msra.gmra.mrb[0].mxu1 %vm98_vm0, %v470_v7 }
   0xf   :  { %444 = vmatprep.mubr.msk.bf16.mxu0 %vm98_vm0, %v471_v8  ;;  %452 = vmatprep.mubr.msk.bf16.mxu1 %vm98_vm0, %v472_v9 }
  0x16   :  { %445 = vmatmul.mubr.msk.bf16.gmra.mrb[4].mxu0 %vm98_vm0, %v473_v10  ;;  %453 = vmatmul.mubr.msk.bf16.gmra.mrb[4].mxu1 %vm98_vm0, %v474_v11 }
  0xe1   :  { %v442_v13 = vpop.f32.mrb[0].mxu0  ;;  %v450_v14 = vpop.f32.mrb[0].mxu1 }
  0xe2   :  { %v170_v15 = vadd.f32 %v442_v13, %v324_v12  ;;  %v202_v16 = vadd.f32 %v450_v14, %v324_v12  ;;  %v161_v17 = vpop.f32.mrb[1].mxu0  ;;  %v193_v18 = vpop.f32.mrb[1].mxu1 }
  0xe3   :  { %v162_v19 = vadd.f32 %v324_v12, %v161_v17  ;;  %v194_v20 = vadd.f32 %v324_v12, %v193_v18  ;;  %v443_v21 = vpop.f32.mrb[2].mxu0  ;;  %v451_v22 = vpop.f32.mrb[2].mxu1 }
  0xe4   :  { %v173_v23 = vadd.f32 %v443_v21, %v324_v12  ;;  %v205_v24 = vadd.f32 %v451_v22, %v324_v12  ;;  %v164_v25 = vpop.f32.mrb[3].mxu0  ;;  %v196_v26 = vpop.f32.mrb[3].mxu1  ;;  %v226_v29 = vmax.f32 %v170_v15, 0.0  ;;  %v234_v30 = vmax.f32 %v202_v16, 0.0 }
  0xe5   :  { %v165_v27 = vadd.f32 %v324_v12, %v164_v25  ;;  %v197_v28 = vadd.f32 %v324_v12, %v196_v26  ;;  %v224_v33 = vmax.f32 %v162_v19, 0.0  ;;  %v232_v34 = vmax.f32 %v194_v20, 0.0 }
  0xe6   :  { %v227_v31 = vmax.f32 %v173_v23, 0.0  ;;  %v235_v32 = vmax.f32 %v205_v24, 0.0 }
  0xe7   :  { %v225_v35 = vmax.f32 %v165_v27, 0.0  ;;  %v233_v36 = vmax.f32 %v197_v28, 0.0 }
  0xe8   :  { %v384_v37 = vpack.c.bf16 %v227_v31, %v226_v29  ;;  %v404_v38 = vpack.c.bf16 %v235_v32, %v234_v30 }
  0xe9   :  { %v379_v39 = vpack.c.bf16 %v225_v35, %v224_v33  ;;  %v399_v40 = vpack.c.bf16 %v233_v36, %v232_v34  ;;  %v446_v41 = vpop.f32.mrb[4].mxu0  ;;  %v454_v42 = vpop.f32.mrb[4].mxu1 }
  0xea   :  { %416 = vst [vmem:[%s566_s3 + $0x8] sm:$0xff] %v384_v37   ;;  %420 = vst [vmem:[%s566_s3 + $0x28] sm:$0xff] %v404_v38   ;;  %v186_v43 = vadd.f32 %v446_v41, %v324_v12  ;;  %v218_v44 = vadd.f32 %v454_v42, %v324_v12  ;;  %v177_v45 = vpop.f32.mrb[5].mxu0  ;;  %v209_v46 = vpop.f32.mrb[5].mxu1 }
  0xeb   :  { %380 = vst [vmem:[%s566_s3] sm:$0xff] %v379_v39   ;;  %419 = vst [vmem:[%s566_s3 + $0x20] sm:$0xff] %v399_v40   ;;  %v178_v47 = vadd.f32 %v324_v12, %v177_v45  ;;  %v210_v48 = vadd.f32 %v324_v12, %v209_v46  ;;  %v447_v49 = vpop.f32.mrb[6].mxu0  ;;  %v455_v50 = vpop.f32.mrb[6].mxu1 }
  0xec   :  { %v189_v51 = vadd.f32 %v447_v49, %v324_v12  ;;  %v221_v52 = vadd.f32 %v455_v50, %v324_v12  ;;  %v180_v53 = vpop.f32.mrb[7].mxu0  ;;  %v212_v54 = vpop.f32.mrb[7].mxu1  ;;  %v230_v57 = vmax.f32 %v186_v43, 0.0  ;;  %v238_v58 = vmax.f32 %v218_v44, 0.0 }
  0xed   :  { %v181_v55 = vadd.f32 %v324_v12, %v180_v53  ;;  %v213_v56 = vadd.f32 %v324_v12, %v212_v54  ;;  %v228_v61 = vmax.f32 %v178_v47, 0.0  ;;  %v236_v62 = vmax.f32 %v210_v48, 0.0 }
  0xee   :  { %v231_v59 = vmax.f32 %v189_v51, 0.0  ;;  %v239_v60 = vmax.f32 %v221_v52, 0.0 }
  0xef   :  { %v229_v63 = vmax.f32 %v181_v55, 0.0  ;;  %v237_v0 = vmax.f32 %v213_v56, 0.0 }
  0xf0   :  { %v394_v1 = vpack.c.bf16 %v231_v59, %v230_v57  ;;  %v414_v2 = vpack.c.bf16 %v239_v60, %v238_v58 }
  0xf1   :  { %v389_v3 = vpack.c.bf16 %v229_v63, %v228_v61  ;;  %v409_v4 = vpack.c.bf16 %v237_v0, %v236_v62 }
  0xf2   :  { %418 = vst [vmem:[%s566_s3 + $0x18] sm:$0xff] %v394_v1   ;;  %422 = vst [vmem:[%s566_s3 + $0x38] sm:$0xff] %v414_v2  }
  0xf3   :  { %417 = vst [vmem:[%s566_s3 + $0x10] sm:$0xff] %v389_v3   ;;  %421 = vst [vmem:[%s566_s3 + $0x30] sm:$0xff] %v409_v4  }

// kernel: dfine_forward.4
= control target key start
LH: loop header
LB: loop body
LE: loop exit
PB: predicated region body
PF: predicated region fallthrough
CT: control target
= control target key end

     0   :  { %v269_v0 = vmov 0   ;;  %vm116_vm0 = vcmask 130048   ;;  %s338_s1 = inlined_call_operand.vmem [shape: bf16[144,128], index: 1, kind: input, shape index: {}]   ;;  %s339_s0 = inlined_call_operand.vmem [shape: bf16[32,144], index: 0, kind: input, shape index: {}]   ;;  %s340_s2 = inlined_call_operand.vmem [shape: f32[1,128], index: 2, kind: input, shape index: {}]   ;;  %s341_s3 = inlined_call_operand.vmem [shape: bf16[32,128], index: 3, kind: output, shape index: {}]  }
   0x1   :  { %123 = vmatprep.subr.bf16.mxu0 %v269_v0  ;;  %235 = vmatprep.subr.bf16.mxu1 %v269_v0  ;;  %v254_v1 = vld [vmem:[%s338_s1] sm:$0xff]   ;;  %v255_v2 = vld [vmem:[%s338_s1 + $0x8] sm:$0xff]   ;;  %v256_v3 = vld [vmem:[%s338_s1 + $0x10] sm:$0xff]  }
   0x2   :  { %124 = vmatpush1.bf16.msra.mxu0 %v254_v1  ;;  %244 = vmatpush1.bf16.msra.mxu1 %v254_v1  ;;  %v257_v4 = vld [vmem:[%s338_s1 + $0x18] sm:$0xff]   ;;  %v265_v5 = vld [vmem:[%s339_s0 + $0x4] ss:$8 sps:$4 sm:$0xff]   ;;  %v260_v9 = vld [vmem:[%s338_s1 + $0x30] sm:$0xff]  }
   0x3   :  { %125 = vmatprep.subr.bf16.mxu0 %v269_v0  ;;  %236 = vmatprep.subr.bf16.mxu1 %v269_v0  ;;  %v268_v6 = vld [vmem:[%s339_s0 + $0x14] ss:$8 sps:$4 sm:$0xff]   ;;  %v258_v7 = vld [vmem:[%s338_s1 + $0x20] sm:$0xff]   ;;  %v259_v8 = vld [vmem:[%s338_s1 + $0x28] sm:$0xff]  }
   0x4   :  { %214 = vmatprep.mubr.msk.bf16.mxu0 %vm116_vm0, %v265_v5  ;;  %215 = vmatprep.mubr.msk.bf16.mxu1 %vm116_vm0, %v268_v6  ;;  %v261_v10 = vld [vmem:[%s338_s1 + $0x38] sm:$0xff]   ;;  %v262_v11 = vld [vmem:[%s338_s1 + $0x40] sm:$0xff]  }
   0x5   :  { %v263_v12 = vld [vmem:[%s339_s0] ss:$8 sps:$4 sm:$0xff]   ;;  %v266_v13 = vld [vmem:[%s339_s0 + $0x10] ss:$8 sps:$4 sm:$0xff]  }
   0x6   :  { %126 = vmatpush1.bf16.msra.mxu0 %v255_v2  ;;  %245 = vmatpush1.bf16.msra.mxu1 %v255_v2  ;;  %v200_v14 = vld [vmem:[%s340_s2] ss:$0 sm:$0xff] }
   0x7   :  { %127 = vmatprep.subr.bf16.mxu0 %v269_v0  ;;  %237 = vmatprep.subr.bf16.mxu1 %v269_v0 }
   0xa   :  { %128 = vmatpush1.bf16.msra.mxu0 %v256_v3  ;;  %246 = vmatpush1.bf16.msra.mxu1 %v256_v3 }
   0xb   :  { %129 = vmatprep.subr.bf16.mxu0 %v269_v0  ;;  %238 = vmatprep.subr.bf16.mxu1 %v269_v0 }
   0xe   :  { %130 = vmatpush1.bf16.msra.mxu0 %v257_v4  ;;  %247 = vmatpush1.bf16.msra.mxu1 %v257_v4 }
   0xf   :  { %131 = vmatprep.subr.bf16.mxu0 %v269_v0  ;;  %239 = vmatprep.subr.bf16.mxu1 %v269_v0 }
  0x12   :  { %132 = vmatpush1.bf16.msra.mxu0 %v258_v7  ;;  %248 = vmatpush1.bf16.msra.mxu1 %v258_v7 }
  0x13   :  { %133 = vmatprep.subr.bf16.mxu0 %v269_v0  ;;  %240 = vmatprep.subr.bf16.mxu1 %v269_v0 }
  0x16   :  { %134 = vmatpush1.bf16.msra.mxu0 %v259_v8  ;;  %249 = vmatpush1.bf16.msra.mxu1 %v259_v8 }
  0x17   :  { %135 = vmatprep.subr.bf16.mxu0 %v269_v0  ;;  %241 = vmatprep.subr.bf16.mxu1 %v269_v0 }
  0x1a   :  { %136 = vmatpush1.bf16.msra.mxu0 %v260_v9  ;;  %250 = vmatpush1.bf16.msra.mxu1 %v260_v9 }
  0x1b   :  { %137 = vmatprep.subr.bf16.mxu0 %v269_v0  ;;  %242 = vmatprep.subr.bf16.mxu1 %v269_v0 }
  0x1e   :  { %138 = vmatpush1.bf16.msra.mxu0 %v261_v10  ;;  %251 = vmatpush1.bf16.msra.mxu1 %v261_v10 }
  0x1f   :  { %139 = vmatprep.subr.bf16.mxu0 %v269_v0  ;;  %243 = vmatprep.subr.bf16.mxu1 %v269_v0 }
  0x22   :  { %140 = vmatpush1.bf16.msra.mxu0 %v262_v11  ;;  %252 = vmatpush1.bf16.msra.mxu1 %v262_v11 }
  0x25   :  { %156 = vmatmul.mubr.bf16.vlgmr.msra.gmra.mrb[0].mxu0 %v263_v12  ;;  %164 = vmatmul.mubr.bf16.vlgmr.msra.gmra.mrb[0].mxu1 %v266_v13 }
  0xf8   :  { %v157_v15 = vpop.f32.mrb[0].mxu0  ;;  %v165_v16 = vpop.f32.mrb[0].mxu1 }
  0xf9   :  { %v158_v17 = vadd.f32 %v200_v14, %v157_v15  ;;  %v166_v18 = vadd.f32 %v200_v14, %v165_v16  ;;  %v159_v19 = vpop.f32.mrb[1].mxu0  ;;  %v167_v20 = vpop.f32.mrb[1].mxu1 }
  0xfa   :  { %v160_v21 = vpop.f32.mrb[2].mxu0  ;;  %v168_v22 = vpop.f32.mrb[2].mxu1 }
  0xfb   :  { %v161_v23 = vadd.f32 %v200_v14, %v160_v21  ;;  %v169_v24 = vadd.f32 %v200_v14, %v168_v22  ;;  %v162_v25 = vpop.f32.mrb[3].mxu0  ;;  %v170_v26 = vpop.f32.mrb[3].mxu1  ;;  %v172_v27 = vmax.f32 %v158_v17, 0.0  ;;  %v174_v28 = vmax.f32 %v166_v18, 0.0 }
  0xfd   :  { %v173_v29 = vmax.f32 %v161_v23, 0.0  ;;  %v175_v30 = vmax.f32 %v169_v24, 0.0 }
  0xff   :  { %v227_v31 = vpack.c.bf16 %v173_v29, %v172_v27  ;;  %v232_v32 = vpack.c.bf16 %v175_v30, %v174_v28 }
 0x101   :  { %228 = vst [vmem:[%s341_s3] sm:$0xff] %v227_v31   ;;  %234 = vst [vmem:[%s341_s3 + $0x8] sm:$0xff] %v232_v32  }

// kernel: dfine_forward.5
= control target key start
LH: loop header
LB: loop body
LE: loop exit
PB: predicated region body
PF: predicated region fallthrough
CT: control target
= control target key end

     0   :  { %s3965_s0 = inlined_call_operand.vmem [shape: bf16[2,16,128], index: 0, kind: input, shape index: {}]   ;;  %s3966_s1 = inlined_call_operand.vmem [shape: f32[8,128], index: 1, kind: input, shape index: {}]   ;;  %s3967_s2 = inlined_call_operand.vmem [shape: bf16[128,128], index: 2, kind: input, shape index: {}]   ;;  %s3968_s3 = inlined_call_operand.vmem [shape: f32[1,128], index: 3, kind: input, shape index: {}]   ;;  %s3969_s4 = inlined_call_operand.vmem [shape: bf16[128,384], index: 4, kind: input, shape index: {}]   ;;  %s3970_s5 = inlined_call_operand.vmem [shape: bf16[128,128], index: 5, kind: input, shape index: {}]   ;;  %s3971_s6 = inlined_call_operand.vmem [shape: f32[1,128], index: 6, kind: input, shape index: {}]   ;;  %s3972_s7 = inlined_call_operand.vmem [shape: f32[1,128], index: 7, kind: input, shape index: {}]   ;;  %s3973_s8 = inlined_call_operand.vmem [shape: bf16[128,128], index: 8, kind: input, shape index: {}]   ;;  %s3974_s9 = inlined_call_operand.vmem [shape: f32[1,128], index: 9, kind: input, shape index: {}]   ;;  %s3975_s10 = inlined_call_operand.vmem [shape: bf16[128,128], index: 10, kind: input, shape index: {}]   ;;  %s3976_s11 = inlined_call_operand.vmem [shape: f32[1,128], index: 11, kind: input, shape index: {}]   ;;  %s3977_s12 = inlined_call_operand.vmem [shape: f32[1,128], index: 12, kind: input, shape index: {}]   ;;  %s3978_s13 = inlined_call_operand.vmem [shape: f32[1,128], index: 13, kind: input, shape index: {}]   ;;  %s3979_s14 = inlined_call_operand.vmem [shape: bf16[128,128], index: 14, kind: input, shape index: {}]   ;;  %s3980_s15 = inlined_call_operand.vmem [shape: bf16[128,256], index: 15, kind: input, shape index: {}]   ;;  %s3981_s16 = inlined_call_operand.vmem [shape: bf16[128,128], index: 16, kind: input, shape index: {}]   ;;  %s3982_s17 = inlined_call_operand.vmem [shape: f32[1,128], index: 17, kind: input, shape index: {}]   ;;  %s3983_s18 = inlined_call_operand.vmem [shape: f32[1,128], index: 18, kind: input, shape index: {}]   ;;  %s3984_s19 = inlined_call_operand.vmem [shape: bf16[128,128], index: 19, kind: input, shape index: {}]   ;;  %s3985_s20 = inlined_call_operand.vmem [shape: f32[1,128], index: 20, kind: input, shape index: {}]   ;;  %s3986_s21 = inlined_call_operand.vmem [shape: bf16[128,128], index: 21, kind: input, shape index: {}]   ;;  %s3987_s22 = inlined_call_operand.vmem [shape: f32[1,128], index: 22, kind: input, shape index: {}]   ;;  %s3988_s23 = inlined_call_operand.vmem [shape: f32[1,128], index: 23, kind: input, shape index: {}]   ;;  %s3989_s24 = inlined_call_operand.vmem [shape: f32[1,128], index: 24, kind: input, shape index: {}]   ;;  %s3990_s25 = inlined_call_operand.vmem [shape: bf16[128,128], index: 25, kind: input, shape index: {}]   ;;  %s3991_s26 = inlined_call_operand.vmem [shape: f32[1,128], index: 26, kind: input, shape index: {}]   ;;  %s3992_s27 = inlined_call_operand.vmem [shape: f32[2,8,128], index: 27, kind: output, shape index: {}]  }
   0x1   :  { %4001 = sst [smem:[#allocation2_spill]] %s3965_s0 }
   0x2   :  { %4002 = sst [smem:[#allocation3_spill]] %s3966_s1 }
   0x3   :  { %4003 = sst [smem:[#allocation4_spill]] %s3967_s2 }
   0x4   :  { %4004 = sst [smem:[#allocation5_spill]] %s3968_s3 }
   0x5   :  { %4005 = sst [smem:[#allocation6_spill]] %s3969_s4 }
   0x6   :  { %4006 = sst [smem:[#allocation7_spill]] %s3970_s5 }
   0x7   :  { %4007 = sst [smem:[#allocation8_spill]] %s3971_s6 }
   0x8   :  { %4008 = sst [smem:[#allocation9_spill]] %s3972_s7  ;;  %s3398_s7 = smov 0  }
   0x9   :  { %4009 = sst [smem:[#allocation10_spill]] %s3973_s8 }
   0xa   :  { %4010 = sst [smem:[#allocation11_spill]] %s3974_s9 }
   0xb   :  { %4011 = sst [smem:[#allocation12_spill]] %s3975_s10 }
   0xc   :  { %4012 = sst [smem:[#allocation13_spill]] %s3976_s11 }
   0xd LB: > { %s2621_s4 = sadd.s32 4294967295, %s3253_s7   ;;  %p2625_p0 = scmp.ge.s32.totalorder %s3253_s7, 1  ;;  %s3253_s7 = sphi %s3398_s7, %s37_s7  }
   0xe   : > { %p737_p1 = scmp.lt.s32.totalorder %s3253_s7, 3 }
  0x10   : > { %p738_p2 = pnand %p2625_p0, %p737_p1 }
  0x11   : > { %s4013_s9 = sld [smem:[#allocation4_spill]] (!%p738_p2)  ;;  %v3255_v1 = vmov (!%p738_p2), 0.0   ;;  %vm3256_vm0 = vmmov (!%p738_p2), 0   ;;  %p808_p3 = scmp.lt.s32.totalorder (!%p738_p2), %s2621_s4, 1  ;;  %v3257_v34 = vmov (!%p738_p2), 0   ;;  %vm1226_vm1 = vcmask (!%p738_p2), 130048  }
  0x12   : > { %741 = sbr.rel (%p738_p2) target bundleno = 4407 (0x1137), region = 128  ;;  %2859 = vmatprep.subr.bf16.mxu0 (!%p738_p2), %v3255_v1  ;;  %2875 = vmatprep.mubr.msk.bf16.mxu0 (!%p738_p2), %vm3256_vm0, %v3255_v1  ;;  %s4014_s11 = sld [smem:[#allocation2_spill]] (!%p738_p2) }
  0x13   : > { %s4015_s28 = sld [smem:[#allocation6_spill]] (!%p738_p2)  ;;  %1131 = vmatprep.mubr.bf16.mxu1 (!%p738_p2), %v3257_v34  ;;  %s4016_s3 = sld [smem:[#allocation5_spill]] (!%p738_p2) }
  0x14   : > { %s4017_s30 = sld [smem:[#allocation7_spill]] (!%p738_p2)  ;;  %s4019_s6 = sld [smem:[#allocation12_spill]] (!%p738_p2) }
  0x15   : > { %s4020_s5 = sld [smem:[#allocation8_spill]] (!%p738_p2)  ;;  %s4021_s1 = sld [smem:[#allocation9_spill]] (!%p738_p2) }
  0x16   : > { %s4022_s10 = sld [smem:[#allocation11_spill]] (!%p738_p2)  ;;  %s4023_s0 = sld [smem:[#allocation13_spill]] (!%p738_p2) }
  0x17   : > { %v3094_v0 = vld [vmem:[%s4013_s9] sm:$0xff] (!%p738_p2)   ;;  %v3095_v2 = vld [vmem:[%s4013_s9 + $0x8] sm:$0xff] (!%p738_p2)   ;;  %v3096_v3 = vld [vmem:[%s4013_s9 + $0x10] sm:$0xff] (!%p738_p2)  }
  0x18   : > { %2860 = vmatpush3.bf16.msra.mxu0 (!%p738_p2), %v3094_v0  ;;  %v3097_v4 = vld [vmem:[%s4013_s9 + $0x18] sm:$0xff] (!%p738_p2)   ;;  %v3098_v9 = vld [vmem:[%s4013_s9 + $0x20] sm:$0xff] (!%p738_p2)   ;;  %v3099_v13 = vld [vmem:[%s4013_s9 + $0x28] sm:$0xff] (!%p738_p2)  }
  0x19   : > { %2861 = vmatprep.subr.bf16.mxu0 %v3255_v1  ;;  %s4027_s4 = smov (!%p808_p3, %s2621_s4), 1  ;;  %v3103_v5 = vld [vmem:[%s4015_s28 + $0x4] ss:$12 sps:$4 sm:$0xff]   ;;  %v3105_v6 = vld [vmem:[%s4015_s28] ss:$12 sps:$4 sm:$0xff]   ;;  %v3101_v18 = vld [vmem:[%s4013_s9 + $0x38] sm:$0xff]  }
  0x1a   : > { %s3998_s29 = sshll.u32 %s4027_s4, 3  ;;  %1099 = vmatprep.subr.bf16.mxu1 %v3103_v5  ;;  %v3107_v7 = vld [vmem:[%s4015_s28 + $0x1c] ss:$12 sps:$4 sm:$0xff]   ;;  %v3109_v8 = vld [vmem:[%s4015_s28 + $0x18] ss:$12 sps:$4 sm:$0xff]   ;;  %v3100_v16 = vld [vmem:[%s4013_s9 + $0x30] sm:$0xff]  }
  0x1b   : > { %s3428_s2 = scalar_lea.vmem %s4014_s11, %s3998_s29  ;;  %1100 = vmatpush1.bf16.msra.mxu1 %v3105_v6  ;;  %v3111_v10 = vld [vmem:[%s4015_s28 + $0x34] ss:$12 sps:$4 sm:$0xff]   ;;  %v3113_v11 = vld [vmem:[%s4015_s28 + $0x30] ss:$12 sps:$4 sm:$0xff]   ;;  %v3115_v12 = vld [vmem:[%s4015_s28 + $0x4c] ss:$12 sps:$4 sm:$0xff]  }
  0x1c   : > { %2862 = vmatpush3.bf16.msra.mxu0 %v3095_v2  ;;  %1101 = vmatprep.subr.bf16.mxu1 %v3107_v7  ;;  %v3117_v14 = vld [vmem:[%s4015_s28 + $0x48] ss:$12 sps:$4 sm:$0xff]   ;;  %v3119_v15 = vld [vmem:[%s4015_s28 + $0x64] ss:$12 sps:$4 sm:$0xff]   ;;  %v3121_v17 = vld [vmem:[%s4015_s28 + $0x60] ss:$12 sps:$4 sm:$0xff]  }
  0x1d   : > { %2863 = vmatprep.subr.bf16.mxu0 %v3255_v1  ;;  %v3123_v19 = vld [vmem:[%s4015_s28 + $0x7c] ss:$12 sps:$4 sm:$0xff]   ;;  %v3125_v20 = vld [vmem:[%s4015_s28 + $0x78] ss:$12 sps:$4 sm:$0xff]   ;;  %v3127_v22 = vld [vmem:[%s4015_s28 + $0x94] ss:$12 sps:$4 sm:$0xff]  }
  0x1e   : > { %v3102_v21 = vld [vmem:[%s3428_s2] sm:$0xff]   ;;  %v3106_v23 = vld [vmem:[%s4015_s28 + $0x8] ss:$12 sps:$4 sm:$0xff]   ;;  %v3118_v26 = vld [vmem:[%s4015_s28 + $0x50] ss:$12 sps:$4 sm:$0xff]   ;;  %s4018_s11 = sld [smem:[#allocation10_spill]] }
  0x1f   : > { %1102 = vmatpush1.bf16.msra.mxu1 %v3109_v8  ;;  %v3110_v24 = vld [vmem:[%s4015_s28 + $0x20] ss:$12 sps:$4 sm:$0xff]   ;;  %v3114_v25 = vld [vmem:[%s4015_s28 + $0x38] ss:$12 sps:$4 sm:$0xff]   ;;  %v3122_v27 = vld [vmem:[%s4015_s28 + $0x68] ss:$12 sps:$4 sm:$0xff]  }
  0x20   : > { %2864 = vmatpush3.bf16.msra.mxu0 %v3096_v3  ;;  %1103 = vmatprep.subr.bf16.mxu1 %v3111_v10  ;;  %v3126_v28 = vld [vmem:[%s4015_s28 + $0x80] ss:$12 sps:$4 sm:$0xff]   ;;  %v3129_v29 = vld [vmem:[%s4015_s28 + $0x90] ss:$12 sps:$4 sm:$0xff]   ;;  %v3130_v30 = vld [vmem:[%s4015_s28 + $0x98] ss:$12 sps:$4 sm:$0xff]  }
  0x21   : > { %2865 = vmatprep.subr.bf16.mxu0 %v3255_v1  ;;  %v3131_v31 = vld [vmem:[%s4015_s28 + $0xac] ss:$12 sps:$4 sm:$0xff]   ;;  %v3133_v32 = vld [vmem:[%s4015_s28 + $0xa8] ss:$12 sps:$4 sm:$0xff]   ;;  %v3134_v33 = vld [vmem:[%s4015_s28 + $0xb0] ss:$12 sps:$4 sm:$0xff]  }
  0x22   : > { %v2629_v35 = vld [vmem:[%s4016_s3] ss:$0 sm:$0xff]  ;;  %s4024_s9 = sld [smem:[#allocation3_spill]] }
  0x23   : > { %1104 = vmatpush1.bf16.msra.mxu1 %v3113_v11 }
  0x24   : > { %2866 = vmatpush3.bf16.msra.mxu0 %v3097_v4  ;;  %1105 = vmatprep.subr.bf16.mxu1 %v3115_v12 }
  0x25   : > { %2867 = vmatprep.subr.bf16.mxu0 %v3255_v1 }
  0x27   : > { %1106 = vmatpush1.bf16.msra.mxu1 %v3117_v14 }
  0x28   : > { %2868 = vmatpush3.bf16.msra.mxu0 %v3098_v9  ;;  %1107 = vmatprep.subr.bf16.mxu1 %v3119_v15  ;;  %v3136_v15 = vld [vmem:[%s4017_s30 + $0x8] sm:$0xff]  }
  0x29   : > { %2869 = vmatprep.subr.bf16.mxu0 %v3255_v1 }
  0x2b   : > { %1108 = vmatpush1.bf16.msra.mxu1 %v3121_v17  ;;  %v3138_v17 = vld [vmem:[%s4017_s30 + $0x18] sm:$0xff]  }
  0x2c   : > { %2870 = vmatpush3.bf16.msra.mxu0 %v3099_v13  ;;  %1109 = vmatprep.subr.bf16.mxu1 %v3123_v19  ;;  %v3135_v13 = vld [vmem:[%s4017_s30] sm:$0xff]   ;;  %v3140_v19 = vld [vmem:[%s4017_s30 + $0x28] sm:$0xff]  }
  0x2d   : > { %2871 = vmatprep.subr.bf16.mxu0 %v3255_v1 }
  0x2f   : > { %1110 = vmatpush1.bf16.msra.mxu1 %v3125_v20  ;;  %v3141_v20 = vld [vmem:[%s4017_s30 + $0x30] sm:$0xff]  }
  0x30   : > { %2872 = vmatpush3.bf16.msra.mxu0 %v3100_v16  ;;  %1111 = vmatprep.subr.bf16.mxu1 %v3127_v22  ;;  %v3137_v16 = vld [vmem:[%s4017_s30 + $0x10] sm:$0xff]  }
  0x31   : > { %2873 = vmatprep.subr.bf16.mxu0 %v3255_v1 }
  0x33   : > { %1112 = vmatpush1.bf16.msra.mxu1 %v3129_v29 }
  0x34   : > { %2874 = vmatpush3.bf16.msra.mxu0 %v3101_v18  ;;  %1113 = vmatprep.subr.bf16.mxu1 %v3131_v31  ;;  %v3139_v18 = vld [vmem:[%s4017_s30 + $0x20] sm:$0xff]  }
  0x35   : > { %2879 = vmatprep.subr.bf16.mxu0 %v3255_v1 }
  0x37   : > { %2876 = vmatmul.mubr.bf16.vlgmr.msra.gmra.mrb[0].mxu0 %v3102_v21  ;;  %1114 = vmatpush1.bf16.msra.mxu1 %v3133_v32  ;;  %v3142_v21 = vld [vmem:[%s4017_s30 + $0x38] sm:$0xff]  }
  0x38   : > { %2880 = vmatpush3.bf16.msra.mxu0 %v3106_v23  ;;  %2895 = vmatprep.mubr.msk.bf16.mxu0 %vm3256_vm0, %v3255_v1 }
  0x39   : > { %2881 = vmatprep.subr.bf16.mxu0 %v3255_v1  ;;  %2899 = vmatprep.subr.bf16.mxu1 %v3255_v1 }
  0x3c   : > { %2882 = vmatpush3.bf16.msra.mxu0 %v3110_v24 }
  0x3d   : > { %2883 = vmatprep.subr.bf16.mxu0 %v3255_v1 }
  0x40   : > { %2884 = vmatpush3.bf16.msra.mxu0 %v3114_v25 }
  0x41   : > { %2885 = vmatprep.subr.bf16.mxu0 %v3255_v1 }
  0x44   : > { %2886 = vmatpush3.bf16.msra.mxu0 %v3118_v26 }
  0x45   : > { %2887 = vmatprep.subr.bf16.mxu0 %v3255_v1 }
  0x48   : > { %2888 = vmatpush3.bf16.msra.mxu0 %v3122_v27 }
  0x49   : > { %2889 = vmatprep.subr.bf16.mxu0 %v3255_v1 }
  0x4c   : > { %2890 = vmatpush3.bf16.msra.mxu0 %v3126_v28 }
  0x4d   : > { %2891 = vmatprep.subr.bf16.mxu0 %v3255_v1 }
  0x50   : > { %2892 = vmatpush3.bf16.msra.mxu0 %v3130_v30 }
  0x51   : > { %2893 = vmatprep.subr.bf16.mxu0 %v3255_v1 }
  0x54   : > { %2894 = vmatpush3.bf16.msra.mxu0 %v3134_v33 }
  0x55   : > { %2931 = vmatprep.subr.bf16.mxu0 %v3255_v1 }
 0x10a   : > { %v931_v36 = vpop.f32.mrb[0].mxu0 }
 0x10b   : > { %v2877_v37 = vpop.f32.mrb[1].mxu0  ;;  %v3539_v39 = vadd.f32 %v2629_v35, %v931_v36  ;;  %v3143_v36 = vld [vmem:[%s4018_s11] sm:$0xff]  }
 0x10c   : > { %v934_v38 = vpop.f32.mrb[2].mxu0  ;;  %v3144_v37 = vld [vmem:[%s4018_s11 + $0x8] sm:$0xff]  }
 0x10d   : > { %v3541_v40 = vadd.f32 %v2629_v35, %v934_v38  ;;  %v2878_v41 = vpop.f32.mrb[3].mxu0  ;;  %v3145_v38 = vld [vmem:[%s4018_s11 + $0x10] sm:$0xff]  }
 0x10e   : > { %v3148_v41 = vld [vmem:[%s4018_s11 + $0x28] sm:$0xff]  }
 0x10f   : > { %v970_v42 = vpack.c.bf16 %v3541_v40, %v3539_v39 }
 0x111   : > { %1132 = vmatmul.mubr.bf16.vlgmr.msra.gmra.mrb[0].mxu1 %v970_v42  ;;  %2896 = vmatmul.mubr.bf16.vlgmr.msra.gmra.mrb[4].mxu0 %v970_v42  ;;  %v3149_v42 = vld [vmem:[%s4018_s11 + $0x30] sm:$0xff]  }
 0x112   : > { %2901 = vmatprep.mubr.msk.bf16.mxu1 %vm3256_vm0, %v3255_v1  ;;  %2947 = vmatprep.mubr.msk.bf16.mxu0 %vm3256_vm0, %v3255_v1 }
 0x113   : > { %2932 = vmatpush3.bf16.msra.mxu0 %v3143_v36 }
 0x114   : > { %2933 = vmatprep.subr.bf16.mxu0 %v3255_v1 }
 0x117   : > { %2934 = vmatpush3.bf16.msra.mxu0 %v3144_v37 }
 0x118   : > { %2935 = vmatprep.subr.bf16.mxu0 %v3255_v1 }
 0x11b   : > { %2936 = vmatpush3.bf16.msra.mxu0 %v3145_v38 }
 0x11c   : > { %2937 = vmatprep.subr.bf16.mxu0 %v3255_v1 }
 0x1e4   : > { %v1133_v43 = vpop.f32.mrb[0].mxu1  ;;  %v1176_v44 = vpop.f32.mrb[4].mxu0 }
 0x1e5   : > { %v1135_v45 = vpop.f32.mrb[1].mxu1  ;;  %v2897_v46 = vpop.f32.mrb[5].mxu0 }
 0x1e6   : > { %v1137_v47 = vpop.f32.mrb[2].mxu1  ;;  %v1179_v48 = vpop.f32.mrb[6].mxu0  ;;  %v3153_v46 = vld [vmem:[%s4019_s6 + $0x10] sm:$0xff]  }
 0x1e7   : > { %v1183_v49 = vpack.c.bf16 %v1137_v47, %v1133_v43  ;;  %v1250_v50 = vpack.c.bf16 %v1179_v48, %v1176_v44  ;;  %v1139_v51 = vpop.f32.mrb[3].mxu1  ;;  %v2898_v52 = vpop.f32.mrb[7].mxu0  ;;  %v3150_v43 = vld [vmem:[%s4018_s11 + $0x38] sm:$0xff]   ;;  %v3151_v44 = vld [vmem:[%s4019_s6] sm:$0xff]  }
 0x1e8   : > { %v1184_v53 = vpack.c.bf16 %v1139_v51, %v1135_v45  ;;  %v3152_v45 = vld [vmem:[%s4019_s6 + $0x8] sm:$0xff]   ;;  %v3154_v47 = vld [vmem:[%s4019_s6 + $0x18] sm:$0xff]   ;;  %v3155_v48 = vld [vmem:[%s4019_s6 + $0x20] sm:$0xff]  }
 0x1ea   : > { %2900 = vmatpush3.bf16.xpose.msra.mxu1 %v1184_v53 }
 0x1eb   : > { %2905 = vmatprep.subr.bf16.mxu1 %v3255_v1 }
 0x1f1   : > { %2902 = vmatmul.mubr.bf16.vlgmr.msra.gmra.mrb[4].mxu1 %v1183_v49  ;;  %v3156_v49 = vld [vmem:[%s4019_s6 + $0x28] sm:$0xff]  }
 0x1f2   : > { %2906 = vmatpush3.bf16.msra.mxu1 %v1250_v50  ;;  %2907 = vmatprep.mubr.msk.bf16.mxu1 %vm3256_vm0, %v3255_v1 }
 0x1f3   : > { %2911 = vmatprep.subr.bf16.mxu1 %v3255_v1 }
 0x2c4   : > { %v1219_v54 = vpop.f32.mrb[4].mxu1 }
 0x2c5   : > { %v2903_v55 = vpop.f32.mrb[5].mxu1  ;;  %v1227_v56 = vsel %vm1226_vm1, %v1219_v54, -inf }
 0x2c6   : > { %1228 = vmax.xlane.f32.xlu0 %v1227_v56  ;;  %v1222_v57 = vpop.f32.mrb[6].mxu1 }
 0x2c7   : > { %v2904_v58 = vpop.f32.mrb[7].mxu1  ;;  %v1230_v59 = vsel %vm1226_vm1, %v1222_v57, -inf }
 0x2ca   : > { %1231 = vmax.xlane.f32.xlu0 %v1230_v59 }
 0x353   : > { %v1229_v60 = vpop.xlane.xlu0 %1228 }
 0x354   : > { %v1233_v61 = vsub.f32 %v1219_v54, %v1229_v60 }
 0x356   : > { %v1235_v62 = vmul.f32 1.442695, %v1233_v61 }
 0x357   : > { %v1232_v63 = vpop.xlane.xlu0 %1231 }
 0x358   : > { %3223 = vpow2.f32 %v1235_v62  ;;  %v1234_v0 = vsub.f32 %v1222_v57, %v1232_v63 }
 0x35a   : > { %v1237_v2 = vmul.f32 1.442695, %v1234_v0 }
 0x35c   : > { %3225 = vpow2.f32 %v1237_v2 }
 0x362   : > { %v3224_v3 = vpop.eup %3223 }
 0x363   : > { %v1239_v4 = vsel %vm1226_vm1, %v3224_v3, 0.0 }
 0x364   : > { %1240 = vadd.xlane.f32.xlu1 %v1239_v4 }
 0x366   : > { %v3226_v5 = vpop.eup %3225 }
 0x367   : > { %v1242_v6 = vsel %vm1226_vm1, %v3226_v5, 0.0 }
 0x368   : > { %1243 = vadd.xlane.f32.xlu1 %v1242_v6 }
 0x3f1   : > { %v1241_v7 = vpop.xlane.xlu1 %1240 }
 0x3f2   : > { %3227 = vrcp.f32 %v1241_v7 }
 0x3f5   : > { %v1244_v8 = vpop.xlane.xlu1 %1243 }
 0x3f6   : > { %3229 = vrcp.f32 %v1244_v8 }
 0x3fc   : > { %v3228_v9 = vpop.eup %3227 }
 0x3fd   : > { %v1247_v11 = vmul.f32 %v3228_v9, %v3224_v3  ;;  %v2672_v3 = vld [vmem:[%s4020_s5] ss:$0 sm:$0xff] }
 0x3fe   : > { %v2673_v9 = vld [vmem:[%s4021_s1] ss:$0 sm:$0xff] }
 0x400   : > { %v3230_v10 = vpop.eup %3229 }
 0x401   : > { %v1248_v12 = vmul.f32 %v3230_v10, %v3226_v5 }
 0x403   : > { %v1249_v14 = vpack.c.bf16 %v1248_v12, %v1247_v11 }
 0x405   : > { %2908 = vmatmul.mubr.msk.bf16.vlgmr.msra.gmra.mrb[8].mxu1 %vm1226_vm1, %v1249_v14  ;;  %v3157_v14 = vld [vmem:[%s4019_s6 + $0x30] sm:$0xff]  }
 0x406   : > { %2912 = vmatpush3.bf16.msra.mxu1 %v3135_v13  ;;  %2927 = vmatprep.mubr.msk.bf16.mxu1 %vm3256_vm0, %v3255_v1 }
 0x407   : > { %2913 = vmatprep.subr.bf16.mxu1 %v3255_v1 }
 0x40a   : > { %2914 = vmatpush3.bf16.msra.mxu1 %v3136_v15  ;;  %v3158_v15 = vld [vmem:[%s4019_s6 + $0x38] sm:$0xff]  }
 0x40b   : > { %2915 = vmatprep.subr.bf16.mxu1 %v3255_v1 }
 0x40e   : > { %2916 = vmatpush3.bf16.msra.mxu1 %v3137_v16  ;;  %v2674_v16 = vld [vmem:[%s4022_s10] ss:$0 sm:$0xff] }
 0x40f   : > { %2917 = vmatprep.subr.bf16.mxu1 %v3255_v1 }
 0x412   : > { %2918 = vmatpush3.bf16.msra.mxu1 %v3138_v17 }
 0x413   : > { %2919 = vmatprep.subr.bf16.mxu1 %v3255_v1 }
 0x416   : > { %2920 = vmatpush3.bf16.msra.mxu1 %v3139_v18 }
 0x417   : > { %2921 = vmatprep.subr.bf16.mxu1 %v3255_v1 }
 0x41a   : > { %2922 = vmatpush3.bf16.msra.mxu1 %v3140_v19 }
 0x41b   : > { %2923 = vmatprep.subr.bf16.mxu1 %v3255_v1 }
 0x41e   : > { %2924 = vmatpush3.bf16.msra.mxu1 %v3141_v20 }
 0x41f   : > { %2925 = vmatprep.subr.bf16.mxu1 %v3255_v1 }
 0x422   : > { %2926 = vmatpush3.bf16.msra.mxu1 %v3142_v21 }
 0x423   : > { %2951 = vmatprep.subr.bf16.mxu1 %v3255_v1 }
 0x4d8   : > { %v1288_v22 = vpop.f32.mrb[8].mxu1 }
 0x4d9   : > { %v2909_v23 = vpop.f32.mrb[9].mxu1 }
 0x4da   : > { %v1291_v24 = vpop.f32.mrb[10].mxu1 }
 0x4db   : > { %v1311_v25 = vpack.c.bf16 %v1291_v24, %v1288_v22  ;;  %v2910_v26 = vpop.f32.mrb[11].mxu1 }
 0x4dc   : > { %v3159_v26 = vld [vmem:[%s3980_s15] ss:$8 sps:$4 sm:$0xff]  }
 0x4dd   : > { %2928 = vmatmul.mubr.bf16.vlgmr.msra.gmra.mrb[12].mxu1 %v1311_v25 }
 0x4de   : > { %2967 = vmatprep.mubr.msk.bf16.mxu1 %vm3256_vm0, %v3255_v1  ;;  %2952 = vmatpush3.bf16.msra.mxu1 %v3151_v44  ;;  %v3169_v44 = vld [vmem:[%s3979_s14 + $0x8] sm:$0xff]  }
 0x4df   : > { %2953 = vmatprep.subr.bf16.mxu1 %v3255_v1 }
 0x4e2   : > { %2954 = vmatpush3.bf16.msra.mxu1 %v3152_v45  ;;  %v3172_v45 = vld [vmem:[%s3980_s15 + $0x34] ss:$8 sps:$4 sm:$0xff]  }
 0x4e3   : > { %2955 = vmatprep.subr.bf16.mxu1 %v3255_v1 }
 0x4e6   : > { %2956 = vmatpush3.bf16.msra.mxu1 %v3153_v46  ;;  %v3170_v46 = vld [vmem:[%s3980_s15 + $0x30] ss:$8 sps:$4 sm:$0xff]  }
 0x4e7   : > { %2957 = vmatprep.subr.bf16.mxu1 %v3255_v1 }
 0x4ea   : > { %2958 = vmatpush3.bf16.msra.mxu1 %v3154_v47  ;;  %v3173_v47 = vld [vmem:[%s3979_s14 + $0x10] sm:$0xff]  }
 0x4eb   : > { %2959 = vmatprep.subr.bf16.mxu1 %v3255_v1 }
 0x4ee   : > { %2960 = vmatpush3.bf16.msra.mxu1 %v3155_v48  ;;  %v3174_v48 = vld [vmem:[%s3980_s15 + $0x40] ss:$8 sps:$4 sm:$0xff]  }
 0x4ef   : > { %2961 = vmatprep.subr.bf16.mxu1 %v3255_v1 }
 0x4f2   : > { %2962 = vmatpush3.bf16.msra.mxu1 %v3156_v49  ;;  %v3176_v49 = vld [vmem:[%s3980_s15 + $0x44] ss:$8 sps:$4 sm:$0xff]  }
 0x4f3   : > { %2963 = vmatprep.subr.bf16.mxu1 %v3255_v1 }
 0x4f6   : > { %2964 = vmatpush3.bf16.msra.mxu1 %v3157_v14 }
 0x4f7   : > { %2965 = vmatprep.subr.bf16.mxu1 %v3255_v1 }
 0x4fa   : > { %2966 = vmatpush3.bf16.msra.mxu1 %v3158_v15 }
 0x5b0   : > { %v1394_v27 = vpop.f32.mrb[12].mxu1 }
 0x5b1   : > { %v3595_v28 = vadd.f32 %v1394_v27, %v3539_v39  ;;  %v2929_v29 = vpop.f32.mrb[13].mxu1  ;;  %v3146_v39 = vld [vmem:[%s4018_s11 + $0x18] sm:$0xff]   ;;  %v3161_v27 = vld [vmem:[%s3980_s15 + $0x4] ss:$8 sps:$4 sm:$0xff]  }
 0x5b2   : > { %v1397_v30 = vpop.f32.mrb[14].mxu1  ;;  %2938 = vmatpush3.bf16.msra.mxu0 %v3146_v39  ;;  %1924 = vmatprep.subr.bf16.mxu1 %v3161_v27  ;;  %v3164_v39 = vld [vmem:[%s3980_s15 + $0x14] ss:$8 sps:$4 sm:$0xff]  }
 0x5b3   : > { %v3598_v31 = vadd.f32 %v1397_v30, %v3541_v40  ;;  %1403 = vadd.xlane.f32.xlu0 %v3595_v28  ;;  %v2930_v32 = vpop.f32.mrb[15].mxu1  ;;  %v1409_v33 = vmul.f32 %v3595_v28, %v3595_v28  ;;  %v3147_v40 = vld [vmem:[%s4018_s11 + $0x20] sm:$0xff]   ;;  %2939 = vmatprep.subr.bf16.mxu0 %v3255_v1 }
 0x5b5   : > { %1405 = vadd.xlane.f32.xlu1 %v3598_v31  ;;  %v1410_v35 = vmul.f32 %v3598_v31, %v3598_v31 }
 0x5b6   : > { %2940 = vmatpush3.bf16.msra.mxu0 %v3147_v40  ;;  %v3162_v40 = vld [vmem:[%s3980_s15 + $0x10] ss:$8 sps:$4 sm:$0xff]  }
 0x5b7   : > { %1411 = vadd.xlane.f32.xlu0 %v1409_v33  ;;  %2941 = vmatprep.subr.bf16.mxu0 %v3255_v1 }
 0x5b9   : > { %1413 = vadd.xlane.f32.xlu1 %v1410_v35 }
 0x5ba   : > { %2942 = vmatpush3.bf16.msra.mxu0 %v3148_v41  ;;  %v3165_v41 = vld [vmem:[%s3979_s14] sm:$0xff]  }
 0x5bb   : > { %2943 = vmatprep.subr.bf16.mxu0 %v3255_v1 }
 0x5be   : > { %2944 = vmatpush3.bf16.msra.mxu0 %v3149_v42  ;;  %v3168_v42 = vld [vmem:[%s3980_s15 + $0x24] ss:$8 sps:$4 sm:$0xff]  }
 0x5bf   : > { %2945 = vmatprep.subr.bf16.mxu0 %v3255_v1 }
 0x5c2   : > { %2946 = vmatpush3.bf16.msra.mxu0 %v3150_v43  ;;  %v3166_v43 = vld [vmem:[%s3980_s15 + $0x20] ss:$8 sps:$4 sm:$0xff]  }
 0x5c3   : > { %2971 = vmatprep.subr.bf16.mxu0 %v3255_v1 }
 0x640   : > { %v1404_v50 = vpop.xlane.xlu0 %1403 }
 0x641   : > { %v1407_v51 = vmul.f32 0.03125, %v1404_v50  ;;  %v3180_v50 = vld [vmem:[%s3980_s15 + $0x54] ss:$8 sps:$4 sm:$0xff]  }
 0x642   : > { %v1406_v52 = vpop.xlane.xlu1 %1405 }
 0x643   : > { %v1408_v53 = vmul.f32 0.03125, %v1406_v52  ;;  %v1417_v55 = vmul.f32 %v1407_v51, %v1407_v51  ;;  %v1421_v0 = vsub.f32 %v3595_v28, %v1407_v51  ;;  %v2683_v28 = vld [vmem:[%s4023_s0] ss:$0 sm:$0xff]  ;;  %v3177_v51 = vld [vmem:[%s3979_s14 + $0x18] sm:$0xff]   ;;  %s4025_s0 = sshll.u32 %s4027_s4, 3 }
 0x644   : > { %v1412_v54 = vpop.xlane.xlu0 %1411  ;;  %v3178_v52 = vld [vmem:[%s3980_s15 + $0x50] ss:$8 sps:$4 sm:$0xff]   ;;  %s816_s29 = scalar_lea.vmem %s3992_s27, %s4025_s0 }
 0x645   : > { %v1415_v56 = vmul.f32 0.03125, %v1412_v54  ;;  %v1418_v58 = vmul.f32 %v1408_v53, %v1408_v53  ;;  %v1422_v4 = vsub.f32 %v3598_v31, %v1408_v53  ;;  %v3184_v53 = vld [vmem:[%s3980_s15 + $0x64] ss:$8 sps:$4 sm:$0xff]  }
 0x646   : > { %v1414_v57 = vpop.xlane.xlu1 %1413  ;;  %v3181_v54 = vld [vmem:[%s3979_s14 + $0x20] sm:$0xff]  }
 0x647   : > { %v1419_v59 = vsub.f32 %v1415_v56, %v1417_v55  ;;  %v1416_v60 = vmul.f32 0.03125, %v1414_v57  ;;  %v3182_v55 = vld [vmem:[%s3980_s15 + $0x60] ss:$8 sps:$4 sm:$0xff]   ;;  %v3188_v56 = vld [vmem:[%s3980_s15 + $0x74] ss:$8 sps:$4 sm:$0xff]  }
 0x648   : > { %v3185_v57 = vld [vmem:[%s3979_s14 + $0x28] sm:$0xff]  }
 0x649   : > { %v1423_v61 = vadd.f32 1e-05, %v1419_v59  ;;  %v1420_v62 = vsub.f32 %v1416_v60, %v1418_v58  ;;  %v3186_v58 = vld [vmem:[%s3980_s15 + $0x70] ss:$8 sps:$4 sm:$0xff]  }
 0x64a   : > { %v3189_v59 = vld [vmem:[%s3979_s14 + $0x30] sm:$0xff]   ;;  %v3190_v60 = vld [vmem:[%s3979_s14 + $0x38] sm:$0xff]  }
 0x64b   : > { %3231 = vrsqrt.f32 %v1423_v61  ;;  %v1424_v63 = vadd.f32 1e-05, %v1420_v62  ;;  %v3779_v61 = vld [vmem:[%s4024_s9] sm:$0xff] }
 0x64c   : > { %v1738_v62 = vpack.c.bf16 %v3779_v61, %v3779_v61 }
 0x64d   : > { %3233 = vrsqrt.f32 %v1424_v63 }
 0x655   : > { %v3232_v2 = vpop.eup %3231 }
 0x656   : > { %v1427_v5 = vmul.f32 %v3232_v2, %v1421_v0 }
 0x657   : > { %v3234_v6 = vpop.eup %3233 }
 0x658   : > { %v1428_v7 = vmul.f32 %v3234_v6, %v1422_v4  ;;  %v1436_v8 = vmul.f32 %v2672_v3, %v1427_v5 }
 0x65a   : > { %v1437_v10 = vmul.f32 %v2672_v3, %v1428_v7  ;;  %v1445_v11 = vadd.f32 %v2673_v9, %v1436_v8 }
 0x65c   : > { %v1446_v12 = vadd.f32 %v2673_v9, %v1437_v10 }
 0x65e   : > { %v1463_v13 = vpack.c.bf16 %v1446_v12, %v1445_v11 }
 0x660   : > { %2948 = vmatmul.mubr.bf16.vlgmr.msra.gmra.mrb[8].mxu0 %v1463_v13 }
 0x661   : > { %2987 = vmatprep.mubr.msk.bf16.mxu0 %vm3256_vm0, %v3255_v1  ;;  %2972 = vmatpush3.bf16.msra.mxu0 %v3165_v41 }
 0x662   : > { %2973 = vmatprep.subr.bf16.mxu0 %v3255_v1 }
 0x665   : > { %2974 = vmatpush3.bf16.msra.mxu0 %v3169_v44 }
 0x666   : > { %2975 = vmatprep.subr.bf16.mxu0 %v3255_v1 }
 0x669   : > { %2976 = vmatpush3.bf16.msra.mxu0 %v3173_v47 }
 0x66a   : > { %2977 = vmatprep.subr.bf16.mxu0 %v3255_v1 }
 0x66d   : > { %2978 = vmatpush3.bf16.msra.mxu0 %v3177_v51  ;;  %v3191_v51 = vld [vmem:[%s3981_s16] sm:$0xff]  }
 0x66e   : > { %2979 = vmatprep.subr.bf16.mxu0 %v3255_v1 }
 0x671   : > { %2980 = vmatpush3.bf16.msra.mxu0 %v3181_v54  ;;  %v3193_v54 = vld [vmem:[%s3981_s16 + $0x10] sm:$0xff]  }
 0x672   : > { %2981 = vmatprep.subr.bf16.mxu0 %v3255_v1 }
 0x675   : > { %2982 = vmatpush3.bf16.msra.mxu0 %v3185_v57  ;;  %v3196_v57 = vld [vmem:[%s3981_s16 + $0x28] sm:$0xff]  }
 0x676   : > { %2983 = vmatprep.subr.bf16.mxu0 %v3255_v1 }
 0x679   : > { %2984 = vmatpush3.bf16.msra.mxu0 %v3189_v59  ;;  %v3198_v59 = vld [vmem:[%s3981_s16 + $0x38] sm:$0xff]  }
 0x67a   : > { %2985 = vmatprep.subr.bf16.mxu0 %v3255_v1 }
 0x67d   : > { %2986 = vmatpush3.bf16.msra.mxu0 %v3190_v60 }
 0x67e   : > { %2991 = vmatprep.subr.bf16.mxu0 %v3255_v1 }
 0x680   : > { %2988 = vmatmul.mubr.bf16.vlgmr.msra.gmra.mrb[12].mxu0 %v1738_v62 }
 0x681   : > { %2993 = vmatprep.mubr.msk.bf16.mxu0 %vm3256_vm0, %v3255_v1 }
 0x733   : > { %v1553_v17 = vpop.f32.mrb[8].mxu0 }
 0x734   : > { %v1554_v18 = vadd.f32 %v2674_v16, %v1553_v17  ;;  %v2949_v19 = vpop.f32.mrb[9].mxu0 }
 0x735   : > { %v1556_v20 = vpop.f32.mrb[10].mxu0 }
 0x736   : > { %v1557_v21 = vadd.f32 %v2674_v16, %v1556_v20  ;;  %v2950_v22 = vpop.f32.mrb[11].mxu0  ;;  %v1560_v23 = vmax.f32 %v1554_v18, 0.0  ;;  %v2692_v16 = vld [vmem:[%s3977_s12] ss:$0 sm:$0xff] }
 0x737   : > { %v2693_v22 = vld [vmem:[%s3978_s13] ss:$0 sm:$0xff] }
 0x738   : > { %v1561_v24 = vmax.f32 %v1557_v21, 0.0 }
 0x73a   : > { %v1578_v25 = vpack.c.bf16 %v1561_v24, %v1560_v23 }
 0x73c   : > { %2968 = vmatmul.mubr.bf16.vlgmr.msra.gmra.mrb[16].mxu1 %v1578_v25 }
 0x73d   : > { %1956 = vmatprep.mubr.bf16.mxu1 %v3257_v34  ;;  %1925 = vmatpush1.bf16.msra.mxu1 %v3159_v26 }
 0x73e   : > { %1926 = vmatprep.subr.bf16.mxu1 %v3164_v39 }
 0x741   : > { %1927 = vmatpush1.bf16.msra.mxu1 %v3162_v40 }
 0x742   : > { %1928 = vmatprep.subr.bf16.mxu1 %v3168_v42 }
 0x745   : > { %1929 = vmatpush1.bf16.msra.mxu1 %v3166_v43 }
 0x746   : > { %1930 = vmatprep.subr.bf16.mxu1 %v3172_v45 }
 0x749   : > { %1931 = vmatpush1.bf16.msra.mxu1 %v3170_v46 }
 0x74a   : > { %1932 = vmatprep.subr.bf16.mxu1 %v3176_v49 }
 0x74d   : > { %1933 = vmatpush1.bf16.msra.mxu1 %v3174_v48 }
 0x74e   : > { %1934 = vmatprep.subr.bf16.mxu1 %v3180_v50 }
 0x751   : > { %1935 = vmatpush1.bf16.msra.mxu1 %v3178_v52 }
 0x752   : > { %1936 = vmatprep.subr.bf16.mxu1 %v3184_v53  ;;  %v3192_v53 = vld [vmem:[%s3981_s16 + $0x8] sm:$0xff]  }
 0x753   : > { %v1821_v27 = vpop.f32.mrb[12].mxu0 }
 0x755   : > { %1937 = vmatpush1.bf16.msra.mxu1 %v3182_v55  ;;  %v3194_v55 = vld [vmem:[%s3981_s16 + $0x18] sm:$0xff]  }
 0x756   : > { %1938 = vmatprep.subr.bf16.mxu1 %v3188_v56  ;;  %v3195_v56 = vld [vmem:[%s3981_s16 + $0x20] sm:$0xff]  }
 0x759   : > { %1939 = vmatpush1.bf16.msra.mxu1 %v3186_v58  ;;  %v3197_v58 = vld [vmem:[%s3981_s16 + $0x30] sm:$0xff]  }
 0x75a   : > { %3023 = vmatprep.subr.bf16.mxu1 %v3255_v1 }
 0x80f   : > { %v1668_v29 = vpop.f32.mrb[16].mxu1 }
 0x810   : > { %v1669_v30 = vadd.f32 %v2683_v28, %v1668_v29  ;;  %v2969_v31 = vpop.f32.mrb[17].mxu1 }
 0x811   : > { %v1671_v32 = vpop.f32.mrb[18].mxu1 }
 0x812   : > { %v3692_v33 = vadd.f32 %v1669_v30, %v1445_v11  ;;  %v1672_v34 = vadd.f32 %v2683_v28, %v1671_v32  ;;  %v2970_v35 = vpop.f32.mrb[19].mxu1  ;;  %v2989_v28 = vpop.f32.mrb[13].mxu0 }
 0x813   : > { %v1824_v29 = vpop.f32.mrb[14].mxu0 }
 0x814   : > { %v3694_v36 = vadd.f32 %v1672_v34, %v1446_v12  ;;  %1677 = vadd.xlane.f32.xlu0 %v3692_v33  ;;  %v1683_v37 = vmul.f32 %v3692_v33, %v3692_v33  ;;  %v2990_v30 = vpop.f32.mrb[15].mxu0 }
 0x816   : > { %1679 = vadd.xlane.f32.xlu1 %v3694_v36  ;;  %v1684_v38 = vmul.f32 %v3694_v36, %v3694_v36 }
 0x818   : > { %1685 = vadd.xlane.f32.xlu0 %v1683_v37  ;;  %v1967_v37 = vpack.c.bf16 %v1821_v27, %v1821_v27 }
 0x81a   : > { %1687 = vadd.xlane.f32.xlu1 %v1684_v38 }
 0x8a1   : > { %v1678_v63 = vpop.xlane.xlu0 %1677 }
 0x8a2   : > { %v1681_v0 = vmul.f32 0.03125, %v1678_v63 }
 0x8a3   : > { %v1680_v2 = vpop.xlane.xlu1 %1679 }
 0x8a4   : > { %v1682_v3 = vmul.f32 0.03125, %v1680_v2  ;;  %v1691_v5 = vmul.f32 %v1681_v0, %v1681_v0  ;;  %v1695_v14 = vsub.f32 %v3692_v33, %v1681_v0 }
 0x8a5   : > { %v1686_v4 = vpop.xlane.xlu0 %1685 }
 0x8a6   : > { %v1689_v6 = vmul.f32 0.03125, %v1686_v4  ;;  %v1692_v8 = vmul.f32 %v1682_v3, %v1682_v3  ;;  %v1696_v17 = vsub.f32 %v3694_v36, %v1682_v3  ;;  %v3199_v3 = vld [vmem:[%s3984_s19] sm:$0xff]  }
 0x8a7   : > { %v1688_v7 = vpop.xlane.xlu1 %1687 }
 0x8a8   : > { %v1693_v9 = vsub.f32 %v1689_v6, %v1691_v5  ;;  %v1690_v10 = vmul.f32 0.03125, %v1688_v7 }
 0x8aa   : > { %v1697_v11 = vadd.f32 1e-05, %v1693_v9  ;;  %v1694_v12 = vsub.f32 %v1690_v10, %v1692_v8  ;;  %v3200_v10 = vld [vmem:[%s3984_s19 + $0x8] sm:$0xff]  }
 0x8ac   : > { %3235 = vrsqrt.f32 %v1697_v11  ;;  %v1698_v13 = vadd.f32 1e-05, %v1694_v12  ;;  %v3201_v11 = vld [vmem:[%s3984_s19 + $0x10] sm:$0xff]   ;;  %v3203_v12 = vld [vmem:[%s3984_s19 + $0x20] sm:$0xff]  }
 0x8ae   : > { %3237 = vrsqrt.f32 %v1698_v13  ;;  %v3204_v13 = vld [vmem:[%s3984_s19 + $0x28] sm:$0xff]  }
 0x8b6   : > { %v3236_v15 = vpop.eup %3235 }
 0x8b7   : > { %v1701_v18 = vmul.f32 %v3236_v15, %v1695_v14  ;;  %v3205_v14 = vld [vmem:[%s3984_s19 + $0x30] sm:$0xff]   ;;  %v3206_v15 = vld [vmem:[%s3984_s19 + $0x38] sm:$0xff]  }
 0x8b8   : > { %v3238_v19 = vpop.eup %3237 }
 0x8b9   : > { %v1702_v20 = vmul.f32 %v3238_v19, %v1696_v17  ;;  %v1710_v21 = vmul.f32 %v2692_v16, %v1701_v18  ;;  %v3208_v17 = vld [vmem:[%s3986_s21 + $0x8] sm:$0xff]   ;;  %v3209_v18 = vld [vmem:[%s3986_s21 + $0x10] sm:$0xff]   ;;  %v3210_v19 = vld [vmem:[%s3986_s21 + $0x18] sm:$0xff]  }
 0x8bb   : > { %v1711_v23 = vmul.f32 %v2692_v16, %v1702_v20  ;;  %v1719_v24 = vadd.f32 %v2693_v22, %v1710_v21  ;;  %v3207_v16 = vld [vmem:[%s3986_s21] sm:$0xff]   ;;  %v3212_v21 = vld [vmem:[%s3986_s21 + $0x28] sm:$0xff]  }
 0x8bc   : > { %v3211_v20 = vld [vmem:[%s3986_s21 + $0x20] sm:$0xff]  }
 0x8bd   : > { %v1720_v25 = vadd.f32 %v2693_v22, %v1711_v23 }
 0x8bf   : > { %v1843_v26 = vpack.c.bf16 %v1720_v25, %v1719_v24 }
 0x8c1   : > { %1957 = vmatmul.mubr.bf16.vlgmr.msra.gmra.mrb[20].mxu1 %v1843_v26 }
 0x8c2   : > { %3039 = vmatprep.mubr.msk.bf16.mxu1 %vm3256_vm0, %v3255_v1  ;;  %3024 = vmatpush3.bf16.msra.mxu1 %v3199_v3 }
 0x8c3   : > { %3025 = vmatprep.subr.bf16.mxu1 %v3255_v1 }
 0x8c6   : > { %3026 = vmatpush3.bf16.msra.mxu1 %v3200_v10  ;;  %v2747_v10 = vld [vmem:[%s3988_s23] ss:$0 sm:$0xff] }
 0x8c7   : > { %3027 = vmatprep.subr.bf16.mxu1 %v3255_v1 }
 0x8ca   : > { %3028 = vmatpush3.bf16.msra.mxu1 %v3201_v11 }
 0x8cb   : > { %3029 = vmatprep.subr.bf16.mxu1 %v3255_v1 }
 0x994   : > { %v1958_v31 = vpop.f32.mrb[20].mxu1 }
 0x995   : > { %v1960_v32 = vpop.f32.mrb[21].mxu1 }
 0x996   : > { %v1962_v33 = vpop.f32.mrb[22].mxu1 }
 0x997   : > { %v1968_v34 = vpack.c.bf16 %v1962_v33, %v1958_v31  ;;  %v1964_v35 = vpop.f32.mrb[23].mxu1  ;;  %v2727_v31 = vld [vmem:[%s3982_s17] ss:$0 sm:$0xff] }
 0x998   : > { %v2021_v36 = vpack.c.bf16 %v1964_v35, %v1960_v32  ;;  %v2728_v33 = vld [vmem:[%s3983_s18] ss:$0 sm:$0xff] }
 0x999   : > { %2992 = vmatpush3.bf16.xpose.msra.mxu0 %v1968_v34 }
 0x99a   : > { %2997 = vmatprep.subr.bf16.mxu0 %v3255_v1 }
 0x9a0   : > { %2994 = vmatmul.mubr.bf16.vlgmr.msra.gmra.mrb[16].mxu0 %v1967_v37  ;;  %v3213_v37 = vld [vmem:[%s3986_s21 + $0x30] sm:$0xff]  }
 0x9a1   : > { %2998 = vmatpush3.bf16.msra.mxu0 %v2021_v36  ;;  %2999 = vmatprep.mubr.msk.bf16.mxu0 %vm3256_vm0, %v3255_v1 }
 0x9a2   : > { %3003 = vmatprep.subr.bf16.mxu0 %v3255_v1 }
 0xa73   : > { %v2003_v38 = vpop.f32.mrb[16].mxu0 }
 0xa74   : > { %v2995_v39 = vpop.f32.mrb[17].mxu0  ;;  %v2009_v40 = vsel %vm1226_vm1, %v2003_v38, -inf }
 0xa75   : > { %2010 = vmax.xlane.f32.xlu0 %v2009_v40  ;;  %v2006_v41 = vpop.f32.mrb[18].mxu0  ;;  %v2729_v39 = vld [vmem:[%s3985_s20] ss:$0 sm:$0xff] }
 0xa76   : > { %v2996_v42 = vpop.f32.mrb[19].mxu0 }
 0xb02   : > { %v2011_v43 = vpop.xlane.xlu0 %2010 }
 0xb03   : > { %v2012_v44 = vsub.f32 %v2003_v38, %v2011_v43  ;;  %v3214_v38 = vld [vmem:[%s3986_s21 + $0x38] sm:$0xff]  }
 0xb05   : > { %v2013_v45 = vmul.f32 1.442695, %v2012_v44 }
 0xb07   : > { %3239 = vpow2.f32 %v2013_v45 }
 0xb11   : > { %v3240_v46 = vpop.eup %3239 }
 0xb12   : > { %v2015_v47 = vsel %vm1226_vm1, %v3240_v46, 0.0 }
 0xb13   : > { %2016 = vadd.xlane.f32.xlu1 %v2015_v47  ;;  %v3215_v47 = vld [vmem:[%s3990_s25] sm:$0xff]  }
 0xba0   : > { %v2017_v48 = vpop.xlane.xlu1 %2016 }
 0xba1   : > { %3241 = vrcp.f32 %v2017_v48  ;;  %v2738_v48 = vld [vmem:[%s3987_s22] ss:$0 sm:$0xff] }
 0xbab   : > { %v3242_v49 = vpop.eup %3241 }
 0xbac   : > { %v2019_v50 = vmul.f32 %v3242_v49, %v3240_v46 }
 0xbae   : > { %v2020_v52 = vpack.c.bf16 %v2019_v50, %v2019_v50 }
 0xbb0   : > { %3000 = vmatmul.mubr.msk.bf16.vlgmr.msra.gmra.mrb[20].mxu0 %vm1226_vm1, %v2020_v52 }
 0xbb1   : > { %3004 = vmatpush3.bf16.msra.mxu0 %v3191_v51  ;;  %3019 = vmatprep.mubr.msk.bf16.mxu0 %vm3256_vm0, %v3255_v1 }
 0xbb2   : > { %3005 = vmatprep.subr.bf16.mxu0 %v3255_v1 }
 0xbb5   : > { %3006 = vmatpush3.bf16.msra.mxu0 %v3192_v53 }
 0xbb6   : > { %3007 = vmatprep.subr.bf16.mxu0 %v3255_v1 }
 0xbb9   : > { %3008 = vmatpush3.bf16.msra.mxu0 %v3193_v54 }
 0xbba   : > { %3009 = vmatprep.subr.bf16.mxu0 %v3255_v1 }
 0xbbd   : > { %3010 = vmatpush3.bf16.msra.mxu0 %v3194_v55 }
 0xbbe   : > { %3011 = vmatprep.subr.bf16.mxu0 %v3255_v1 }
 0xbc1   : > { %3012 = vmatpush3.bf16.msra.mxu0 %v3195_v56  ;;  %v3216_v56 = vld [vmem:[%s3990_s25 + $0x8] sm:$0xff]  }
 0xbc2   : > { %3013 = vmatprep.subr.bf16.mxu0 %v3255_v1 }
 0xbc5   : > { %3014 = vmatpush3.bf16.msra.mxu0 %v3196_v57  ;;  %v3217_v57 = vld [vmem:[%s3990_s25 + $0x10] sm:$0xff]  }
 0xbc6   : > { %3015 = vmatprep.subr.bf16.mxu0 %v3255_v1 }
 0xbc9   : > { %3016 = vmatpush3.bf16.msra.mxu0 %v3197_v58  ;;  %v3218_v58 = vld [vmem:[%s3990_s25 + $0x18] sm:$0xff]  }
 0xbca   : > { %3017 = vmatprep.subr.bf16.mxu0 %v3255_v1 }
 0xbcd   : > { %3018 = vmatpush3.bf16.msra.mxu0 %v3198_v59  ;;  %v3219_v59 = vld [vmem:[%s3990_s25 + $0x20] sm:$0xff]  }
 0xbce   : > { %3043 = vmatprep.subr.bf16.mxu0 %v3255_v1 }
 0xc83   : > { %v2059_v60 = vpop.f32.mrb[20].mxu0 }
 0xc84   : > { %v2081_v62 = vpack.c.bf16 %v2059_v60, %v2059_v60  ;;  %v3001_v63 = vpop.f32.mrb[21].mxu0  ;;  %v3220_v60 = vld [vmem:[%s3990_s25 + $0x28] sm:$0xff]  }
 0xc85   : > { %v2062_v0 = vpop.f32.mrb[22].mxu0  ;;  %v3222_v63 = vld [vmem:[%s3990_s25 + $0x38] sm:$0xff]  }
 0xc86   : > { %v3002_v2 = vpop.f32.mrb[23].mxu0  ;;  %3020 = vmatmul.mubr.bf16.vlgmr.msra.gmra.mrb[24].mxu0 %v2081_v62  ;;  %v3221_v62 = vld [vmem:[%s3990_s25 + $0x30] sm:$0xff]  }
 0xc87   : > { %3059 = vmatprep.mubr.msk.bf16.mxu0 %vm3256_vm0, %v3255_v1  ;;  %3044 = vmatpush3.bf16.msra.mxu0 %v3207_v16 }
 0xc88   : > { %3045 = vmatprep.subr.bf16.mxu0 %v3255_v1 }
 0xc8b   : > { %3046 = vmatpush3.bf16.msra.mxu0 %v3208_v17 }
 0xc8c   : > { %3047 = vmatprep.subr.bf16.mxu0 %v3255_v1 }
 0xc8f   : > { %3048 = vmatpush3.bf16.msra.mxu0 %v3209_v18 }
 0xc90   : > { %3049 = vmatprep.subr.bf16.mxu0 %v3255_v1 }
 0xc93   : > { %3050 = vmatpush3.bf16.msra.mxu0 %v3210_v19 }
 0xc94   : > { %3051 = vmatprep.subr.bf16.mxu0 %v3255_v1 }
 0xc97   : > { %3052 = vmatpush3.bf16.msra.mxu0 %v3211_v20 }
 0xc98   : > { %3053 = vmatprep.subr.bf16.mxu0 %v3255_v1 }
 0xc9b   : > { %3054 = vmatpush3.bf16.msra.mxu0 %v3212_v21 }
 0xc9c   : > { %3055 = vmatprep.subr.bf16.mxu0 %v3255_v1 }
 0xc9f   : > { %3056 = vmatpush3.bf16.msra.mxu0 %v3213_v37 }
 0xca0   : > { %3057 = vmatprep.subr.bf16.mxu0 %v3255_v1 }
 0xca3   : > { %3058 = vmatpush3.bf16.msra.mxu0 %v3214_v38 }
 0xd59   : > { %v2164_v4 = vpop.f32.mrb[24].mxu0 }
 0xd5a   : > { %v2170_v5 = vadd.f32 %v2164_v4, %v3779_v61  ;;  %v3021_v6 = vpop.f32.mrb[25].mxu0  ;;  %v3202_v61 = vld [vmem:[%s3984_s19 + $0x18] sm:$0xff]  }
 0xd5b   : > { %v2167_v7 = vpop.f32.mrb[26].mxu0  ;;  %3030 = vmatpush3.bf16.msra.mxu1 %v3202_v61 }
 0xd5c   : > { %2171 = vadd.xlane.f32.xlu0 %v2170_v5  ;;  %v3022_v8 = vpop.f32.mrb[27].mxu0  ;;  %v2174_v9 = vmul.f32 %v2170_v5, %v2170_v5  ;;  %3031 = vmatprep.subr.bf16.mxu1 %v3255_v1 }
 0xd5e   : > { %2175 = vadd.xlane.f32.xlu1 %v2174_v9 }
 0xd5f   : > { %3032 = vmatpush3.bf16.msra.mxu1 %v3203_v12 }
 0xd60   : > { %3033 = vmatprep.subr.bf16.mxu1 %v3255_v1 }
 0xd63   : > { %3034 = vmatpush3.bf16.msra.mxu1 %v3204_v13 }
 0xd64   : > { %3035 = vmatprep.subr.bf16.mxu1 %v3255_v1 }
 0xd67   : > { %3036 = vmatpush3.bf16.msra.mxu1 %v3205_v14  ;;  %v2749_v14 = vld [vmem:[%s3991_s26] ss:$0 sm:$0xff] }
 0xd68   : > { %3037 = vmatprep.subr.bf16.mxu1 %v3255_v1 }
 0xd6b   : > { %3038 = vmatpush3.bf16.msra.mxu1 %v3206_v15 }
 0xd6c   : > { %3063 = vmatprep.subr.bf16.mxu1 %v3255_v1 }
 0xde9   : > { %v2172_v22 = vpop.xlane.xlu0 %2171 }
 0xdea   : > { %v2173_v23 = vmul.f32 0.03125, %v2172_v22 }
 0xdeb   : > { %v2176_v24 = vpop.xlane.xlu1 %2175 }
 0xdec   : > { %v2178_v25 = vmul.f32 %v2173_v23, %v2173_v23  ;;  %v2177_v26 = vmul.f32 0.03125, %v2176_v24  ;;  %v2180_v29 = vsub.f32 %v2170_v5, %v2173_v23 }
 0xdee   : > { %v2179_v27 = vsub.f32 %v2177_v26, %v2178_v25 }
 0xdf0   : > { %v2181_v28 = vadd.f32 1e-05, %v2179_v27 }
 0xdf2   : > { %3243 = vrsqrt.f32 %v2181_v28 }
 0xdfc   : > { %v3244_v30 = vpop.eup %3243 }
 0xdfd   : > { %v2183_v32 = vmul.f32 %v3244_v30, %v2180_v29 }
 0xdff   : > { %v2191_v34 = vmul.f32 %v2727_v31, %v2183_v32 }
 0xe01   : > { %v2199_v35 = vadd.f32 %v2728_v33, %v2191_v34 }
 0xe03   : > { %v2216_v36 = vpack.c.bf16 %v2199_v35, %v2199_v35 }
 0xe05   : > { %3040 = vmatmul.mubr.bf16.vlgmr.msra.gmra.mrb[24].mxu1 %v2216_v36 }
 0xe06   : > { %3079 = vmatprep.mubr.msk.bf16.mxu1 %vm3256_vm0, %v3255_v1  ;;  %3064 = vmatpush3.bf16.msra.mxu1 %v3215_v47 }
 0xe07   : > { %3065 = vmatprep.subr.bf16.mxu1 %v3255_v1 }
 0xe0a   : > { %3066 = vmatpush3.bf16.msra.mxu1 %v3216_v56 }
 0xe0b   : > { %3067 = vmatprep.subr.bf16.mxu1 %v3255_v1 }
 0xe0e   : > { %3068 = vmatpush3.bf16.msra.mxu1 %v3217_v57 }
 0xe0f   : > { %3069 = vmatprep.subr.bf16.mxu1 %v3255_v1 }
 0xe12   : > { %3070 = vmatpush3.bf16.msra.mxu1 %v3218_v58 }
 0xe13   : > { %3071 = vmatprep.subr.bf16.mxu1 %v3255_v1 }
 0xe16   : > { %3072 = vmatpush3.bf16.msra.mxu1 %v3219_v59 }
 0xe17   : > { %3073 = vmatprep.subr.bf16.mxu1 %v3255_v1 }
 0xe1a   : > { %3074 = vmatpush3.bf16.msra.mxu1 %v3220_v60 }
 0xe1b   : > { %3075 = vmatprep.subr.bf16.mxu1 %v3255_v1 }
 0xe1e   : > { %3076 = vmatpush3.bf16.msra.mxu1 %v3221_v62 }
 0xe1f   : > { %3077 = vmatprep.subr.bf16.mxu1 %v3255_v1  ;;  %v2748_v1 = vld [vmem:[%s3989_s24] ss:$0 sm:$0xff] }
 0xe22   : > { %3078 = vmatpush3.bf16.msra.mxu1 %v3222_v63 }
 0xed8   : > { %v2306_v40 = vpop.f32.mrb[24].mxu1 }
 0xed9   : > { %v2307_v41 = vadd.f32 %v2729_v39, %v2306_v40  ;;  %v3041_v42 = vpop.f32.mrb[25].mxu1 }
 0xeda   : > { %v2309_v43 = vpop.f32.mrb[26].mxu1 }
 0xedb   : > { %v2312_v44 = vmax.f32 %v2307_v41, 0.0  ;;  %v3042_v45 = vpop.f32.mrb[27].mxu1 }
 0xedd   : > { %v2329_v46 = vpack.c.bf16 %v2312_v44, %v2312_v44 }
 0xedf   : > { %3060 = vmatmul.mubr.bf16.vlgmr.msra.gmra.mrb[28].mxu0 %v2329_v46 }
 0xfb2   : > { %v2419_v49 = vpop.f32.mrb[28].mxu0 }
 0xfb3   : > { %v2420_v50 = vadd.f32 %v2738_v48, %v2419_v49  ;;  %v3061_v51 = vpop.f32.mrb[29].mxu0 }
 0xfb4   : > { %v2422_v52 = vpop.f32.mrb[30].mxu0 }
 0xfb5   : > { %v2425_v53 = vadd.f32 %v2420_v50, %v2199_v35  ;;  %v3062_v54 = vpop.f32.mrb[31].mxu0 }
 0xfb7   : > { %2426 = vadd.xlane.f32.xlu0 %v2425_v53  ;;  %v2429_v55 = vmul.f32 %v2425_v53, %v2425_v53 }
 0xfb9   : > { %2430 = vadd.xlane.f32.xlu1 %v2429_v55 }
0x1044   : > { %v2427_v0 = vpop.xlane.xlu0 %2426 }
0x1045   : > { %v2428_v2 = vmul.f32 0.03125, %v2427_v0 }
0x1046   : > { %v2431_v3 = vpop.xlane.xlu1 %2430 }
0x1047   : > { %v2433_v4 = vmul.f32 %v2428_v2, %v2428_v2  ;;  %v2432_v5 = vmul.f32 0.03125, %v2431_v3  ;;  %v2435_v8 = vsub.f32 %v2425_v53, %v2428_v2 }
0x1049   : > { %v2434_v6 = vsub.f32 %v2432_v5, %v2433_v4 }
0x104b   : > { %v2436_v7 = vadd.f32 1e-05, %v2434_v6 }
0x104d   : > { %3245 = vrsqrt.f32 %v2436_v7 }
0x1057   : > { %v3246_v9 = vpop.eup %3245 }
0x1058   : > { %v2438_v11 = vmul.f32 %v3246_v9, %v2435_v8 }
0x105a   : > { %v2446_v61 = vmul.f32 %v2747_v10, %v2438_v11 }
0x105c   : > { %v2454_v12 = vadd.f32 %v2748_v1, %v2446_v61 }
0x105e   : > { %v2471_v13 = vpack.c.bf16 %v2454_v12, %v2454_v12 }
0x1060   : > { %3080 = vmatmul.mubr.bf16.vlgmr.msra.gmra.mrb[28].mxu1 %v2471_v13 }
0x1133   : > { %v2561_v15 = vpop.f32.mrb[28].mxu1 }
0x1134   : > { %v2562_v16 = vadd.f32 %v2749_v14, %v2561_v15  ;;  %v3081_v17 = vpop.f32.mrb[29].mxu1 }
0x1135   : > { %v2564_v18 = vpop.f32.mrb[30].mxu1 }
0x1136   : > { %2567 = vst [vmem:[%s816_s29] sm:$0xff] %v2562_v16  ;;  %v3082_v19 = vpop.f32.mrb[31].mxu1 }
0x1137 PF: > { %s37_s7 = sadd.s32 1, %s3253_s7  }
0x1138   : > { %p34_p4 = scmp.ge.s32.totalorder %s37_s7, 4  }
0x113a   :  { %36 = sbr.rel (!%p34_p4) target bundleno = 13 (0xd), region = 158 }

</bundles_post_ra>
